<compile_context>
chip_gen: v6e
topology: v6e:2x2x1
jax: 0.10.0
libtpu: 0.0.40
codegen_flags: <defaults>
</compile_context>

<pallas_src>
import functools

import numpy as np
import jax
import jax.numpy as jnp
from jax import lax
from jax.experimental import pallas as pl
from jax.experimental.pallas import tpu as pltpu

EPS = 1e-5        # PyTorch BatchNorm1d default eps
OUT_PAD = 128     # lane-dense padded width of the final Linear / output store


def _round_up(n, m):
    return ((n + m - 1) // m) * m


# ------------------------------ Pallas kernel --------------------------------
def make_mlrp_kernel(n_blocks, phase_pp):
    """n_blocks x [Conv1d(k3,p1)+BN(eval)+ReLU+MaxPool1d(3)+Dropout] -> Linear -> ReLU.

    Per block: one merged BN-folded conv matmul of shape (K, 3*pp) whose three
    lane-aligned column slabs are the maxpool phases; maxpool = elementwise max of
    the slabs, then ReLU (order exchange is exact).
    """

    def kernel(x_ref, *refs):
        out_ref = refs[-1]
        w = refs[:-1]
        h = x_ref[...]                                        # (TB, K0) f32
        for blk in range(n_blocks):
            m_ref, b_ref = w[2 * blk], w[2 * blk + 1]
            pp = phase_pp[blk]
            y = jnp.dot(h.astype(jnp.bfloat16), m_ref[...],
                        preferred_element_type=jnp.float32) + b_ref[...]
            z = jnp.maximum(jnp.maximum(y[:, :pp], y[:, pp:2 * pp]),
                            y[:, 2 * pp:3 * pp])              # MaxPool1d(3) phases
            h = jnp.maximum(z, 0.0)                           # ReLU (commutes with max)
            # TODO(synk): Dropout is identity here (inference/eval semantics).
        wout_ref, bout_ref = w[2 * n_blocks], w[2 * n_blocks + 1]
        yo = jnp.dot(h.astype(jnp.bfloat16), wout_ref[...],
                     preferred_element_type=jnp.float32) + bout_ref[...]
        # Duplicate 'output' module name in the PyTorch Sequential: ReLU replaces Sigmoid.
        out_ref[...] = jnp.maximum(yo, 0.0)

    return kernel


# -------------------------------- wrapper -------------------------------------
def mlrp_forward_pallas(x, operands, *, n_blocks, out_dim, phase_pp, batch_tile=1024):
    b, lin = x.shape
    bp = _round_up(b, 8)                         # pad only to sublane multiple
    tb = min(batch_tile, bp)
    if bp // tb < 2 and bp > 8:
        # Guarantee >= 2 grid steps so v7x's two TensorCores both get work;
        # harmless (pure pipelining) on single-TC v5e/v6e.
        tb = _round_up(pl.cdiv(bp, 2), 8)
    if bp != b:
        x = jnp.pad(x, ((0, bp - b), (0, 0)))    # pad rows; sliced off below
    grid = pl.cdiv(bp, tb)                       # ragged last block handled by Pallas

    vmem = pl.BlockSpec(memory_space=pltpu.MemorySpace.VMEM)   # weights whole-array in VMEM
    out = pl.pallas_call(
        make_mlrp_kernel(n_blocks, phase_pp),
        out_shape=jax.ShapeDtypeStruct((bp, OUT_PAD), jnp.float32),
        grid=(grid,),
        in_specs=[pl.BlockSpec((tb, lin), lambda i: (i, 0))] + [vmem] * len(operands),
        out_specs=pl.BlockSpec((tb, OUT_PAD), lambda i: (i, 0)),
        # Batch tiles are independent -> "parallel" (megacore shard on v7x, no-op elsewhere).
        compiler_params=pltpu.CompilerParams(dimension_semantics=("parallel",)),
    )(x.astype(jnp.float32), *operands)
    return out[:b, :out_dim]


# -------------------- host-side operator construction (once) ------------------
def _conv_band_matrix(w, lin):
    """Conv1d(k=3, pad=1, stride=1) as a (Cin*lin, Cout*lin) matrix on NCL-flat features."""
    cout, cin, kk = w.shape
    d = np.arange(lin)[:, None] - np.arange(lin)[None, :] + 1      # tap index l - n + 1
    band = (d >= 0) & (d <= kk - 1)
    tap = np.clip(d, 0, kk - 1)
    wt = np.transpose(w, (2, 1, 0))                                # (K, Cin, Cout)
    kmat = band[:, :, None, None] * wt[tap]                        # (lin, lin, Cin, Cout)
    return np.transpose(kmat, (2, 0, 3, 1)).reshape(cin * lin, cout * lin)


def prepare_operands(params, sizes, lin0, out_dim):
    """Built ONCE with numpy (compile-time constants).

    Per block: one merged BN-folded maxpool-phase-split operator matrix (K_in, 3*pp) in
    bf16 plus an f32 bias row (1, 3*pp); pp = round_up(Cout*Lout, 128), padded columns
    are zero.  Tail: output Linear zero-padded to OUT_PAD columns (lane-dense store).
    """
    n_blocks = len(sizes) - 1
    ops, phase_pp = [], []
    lin = lin0
    in_width = sizes[0] * lin0                 # current (possibly padded) flat feature width
    for i in range(n_blocks):
        w = np.asarray(params[f'w{i}'], np.float64)
        bias = np.asarray(params[f'b{i}'], np.float64)
        g = np.asarray(params[f'g{i}'], np.float64)
        be = np.asarray(params[f'be{i}'], np.float64)
        rm = np.asarray(params[f'rm{i}'], np.float64)
        rv = np.asarray(params[f'rv{i}'], np.float64)
        cin, cout = w.shape[1], w.shape[0]
        lout = lin // 3                        # MaxPool1d(3) truncates, same as PyTorch

        m = _conv_band_matrix(w, lin)          # (cin*lin, cout*lin)
        s = g / np.sqrt(rv + EPS)              # fold eval-mode BatchNorm
        t = be - rm * s
        m = m * np.repeat(s, lin)[None, :]
        brow = np.repeat(bias, lin) * np.repeat(s, lin) + np.repeat(t, lin)

        pw = cout * lout
        pp = _round_up(pw, 128)
        big = np.zeros((in_width, 3 * pp))
        brg = np.zeros((1, 3 * pp))
        for k in range(3):                     # maxpool phase-k columns, lane-aligned slab
            sel = ((np.arange(cout) * lin)[:, None]
                   + (np.arange(lout) * 3 + k)[None, :]).reshape(-1)
            big[:cin * lin, k * pp: k * pp + pw] = m[:, sel]
            brg[0, k * pp: k * pp + pw] = brow[sel]
        ops.append(jnp.asarray(big, jnp.bfloat16))   # MXU truncates to bf16 anyway
        ops.append(jnp.asarray(brg, jnp.float32))
        phase_pp.append(pp)
        lin, in_width = lout, pp

    wt = np.asarray(params['wout'], np.float64).T    # (feat, out)
    wo = np.zeros((in_width, OUT_PAD))
    wo[:wt.shape[0], :out_dim] = wt
    bo = np.zeros((1, OUT_PAD))
    bo[0, :out_dim] = np.asarray(params['bout'], np.float64)
    ops.append(jnp.asarray(wo, jnp.bfloat16))
    ops.append(jnp.asarray(bo, jnp.float32))
    return tuple(ops), tuple(phase_pp)


# ---------------------------- pure-JAX reference -------------------------------
def mlrp_forward_ref(x, params, sizes):
    hp = lax.Precision.HIGHEST
    h = x[:, None, :].astype(jnp.float32)                          # (B, 1, L)  NCL
    for i in range(len(sizes) - 1):
        w, b = params[f'w{i}'], params[f'b{i}']
        g, be = params[f'g{i}'], params[f'be{i}']
        rm, rv = params[f'rm{i}'], params[f'rv{i}']
        h = lax.conv_general_dilated(h, w, (1,), [(1, 1)],
                                     dimension_numbers=('NCH', 'OIH', 'NCH'),
                                     precision=hp)
        h = h + b[None, :, None]
        h = (h - rm[None, :, None]) / jnp.sqrt(rv[None, :, None] + EPS)
        h = h * g[None, :, None] + be[None, :, None]
        h = jnp.maximum(h, 0.0)
        bb, cc, ll = h.shape
        h = h[:, :, :(ll // 3) * 3].reshape(bb, cc, ll // 3, 3).max(-1)   # MaxPool1d(3)
        # Dropout: identity (eval)
    feat = h.reshape(h.shape[0], -1)
    y = jnp.dot(feat, params['wout'].T, precision=hp) + params['bout']
    return jnp.maximum(y, 0.0)       # duplicate 'output' name: ReLU replaces Sigmoid


# ----------------------------------- main --------------------------------------
def build_params(sizes, out_dim, feat_dim, key):
    keys = jax.random.split(key, 6 * (len(sizes) - 1) + 2)
    f = jnp.float32
    p, ki = {}, 0
    for i in range(len(sizes) - 1):
        cin, cout = sizes[i], sizes[i + 1]
        p[f'w{i}'] = 0.4 * jax.random.normal(keys[ki], (cout, cin, 3), f); ki += 1
        p[f'b{i}'] = 0.1 * jax.random.normal(keys[ki], (cout,), f); ki += 1
        p[f'g{i}'] = 1.0 + 0.1 * jax.random.normal(keys[ki], (cout,), f); ki += 1
        p[f'be{i}'] = 0.1 * jax.random.normal(keys[ki], (cout,), f); ki += 1
        p[f'rm{i}'] = 0.1 * jax.random.normal(keys[ki], (cout,), f); ki += 1
        p[f'rv{i}'] = 0.5 + jax.random.uniform(keys[ki], (cout,), f); ki += 1
    p['wout'] = 0.15 * jax.random.normal(keys[ki], (out_dim, feat_dim), f); ki += 1
    p['bout'] = 0.1 * jax.random.normal(keys[ki], (out_dim,), f)
    return p


if __name__ == "__main__":
    # MLRP(sizes=[1, 4, 8], drops=[0.1], out=16): two Conv+BN+ReLU+MaxPool(3)+Dropout
    # blocks, then Linear(192, 16) + ReLU.  Input length 216 -> 72 -> 24; 8*24 = 192,
    # matching the module's hard-coded Linear(192, out).
    sizes = [1, 4, 8]
    out_dim = 16
    lin0 = 216
    n_blocks = len(sizes) - 1
    feat_dim = sizes[-1] * (lin0 // 3 ** n_blocks)
    assert feat_dim == 192, "input length must make C_last*L_last == 192"

    kp, kx, kx2 = jax.random.split(jax.random.PRNGKey(0), 3)
    params = build_params(sizes, out_dim, feat_dim, kp)
    operands, phase_pp = prepare_operands(params, sizes, lin0, out_dim)   # host-side, once

    fwd = jax.jit(functools.partial(mlrp_forward_pallas, operands=operands,
                                    n_blocks=n_blocks, out_dim=out_dim,
                                    phase_pp=phase_pp))

    # Small batch -> single grid step.
    x1 = jax.random.normal(kx, (4, lin0), jnp.float32)
    out1 = jax.block_until_ready(fwd(x1))                         # (4, 16)
    ref1 = jax.block_until_ready(mlrp_forward_ref(x1, params, sizes))
    np.testing.assert_allclose(np.asarray(out1), np.asarray(ref1), atol=5e-2, rtol=5e-2)

    # Batch exercising the >=2-step grid (dual-TC split) and the ragged last block.
    x2 = jax.random.normal(kx2, (20, lin0), jnp.float32)
    out2 = jax.block_until_ready(fwd(x2))                         # (20, 16)
    ref2 = jax.block_until_ready(mlrp_forward_ref(x2, params, sizes))
    np.testing.assert_allclose(np.asarray(out2), np.asarray(ref2), atol=5e-2, rtol=5e-2)

    # Tolerance sized for bf16-input / f32-accumulate MXU math (K <= 384) vs the
    # HIGHEST-precision pure-JAX reference.
    print("KERNEL_OK")
</pallas_src>

<mosaic_0001>
module attributes {stable_mosaic.version = 11 : i64} {
  func.func @kernel(%arg0: i32, %arg1: memref<8x216xf32, #tpu.memory_space<vmem>>, %arg2: memref<216x1152xbf16, #tpu.memory_space<vmem>>, %arg3: memref<1x1152xf32, #tpu.memory_space<vmem>>, %arg4: memref<384x768xbf16, #tpu.memory_space<vmem>>, %arg5: memref<1x768xf32, #tpu.memory_space<vmem>>, %arg6: memref<256x128xbf16, #tpu.memory_space<vmem>>, %arg7: memref<1x128xf32, #tpu.memory_space<vmem>>, %arg8: memref<8x128xf32, #tpu.memory_space<vmem>>) attributes {dimension_semantics = [#tpu.dimension_semantics<parallel>], iteration_bounds = array<i64: 1>, scalar_prefetch = 0 : i64, scratch_operands = 0 : i64, tpu.core_type = #tpu.core_type<tc>, window_params = [{transform_indices = @transform_0, window_bounds = array<i64: 8, 216>}, {pipeline_mode = #tpu.pipeline_mode<synchronous>, transform_indices = @transform_1, window_bounds = array<i64: 216, 1152>}, {pipeline_mode = #tpu.pipeline_mode<synchronous>, transform_indices = @transform_2, window_bounds = array<i64: 1, 1152>}, {pipeline_mode = #tpu.pipeline_mode<synchronous>, transform_indices = @transform_3, window_bounds = array<i64: 384, 768>}, {pipeline_mode = #tpu.pipeline_mode<synchronous>, transform_indices = @transform_4, window_bounds = array<i64: 1, 768>}, {pipeline_mode = #tpu.pipeline_mode<synchronous>, transform_indices = @transform_5, window_bounds = array<i64: 256, 128>}, {pipeline_mode = #tpu.pipeline_mode<synchronous>, transform_indices = @transform_6, window_bounds = array<i64: 1, 128>}, {transform_indices = @transform_7, window_bounds = array<i64: 8, 128>}]} {
    %c0 = arith.constant 0 : index
    %c0_0 = arith.constant 0 : index
    %0 = vector.load %arg1[%c0, %c0_0] : memref<8x216xf32, #tpu.memory_space<vmem>>, vector<8x216xf32>
    %1 = arith.truncf %0 : vector<8x216xf32> to vector<8x216xbf16>
    %c0_1 = arith.constant 0 : index
    %c0_2 = arith.constant 0 : index
    %2 = vector.load %arg2[%c0_1, %c0_2] : memref<216x1152xbf16, #tpu.memory_space<vmem>>, vector<216x1152xbf16>
    %cst = arith.constant dense<0.000000e+00> : vector<8x1152xf32>
    %3 = tpu.matmul %1, %2, %cst {dimension_numbers = #tpu.dot_dimension_numbers<[1], [0], [0], [1], [0, 0, 1, 1], [], []>} : vector<8x216xbf16>, vector<216x1152xbf16>, vector<8x1152xf32> -> vector<8x1152xf32>
    %c0_3 = arith.constant 0 : index
    %c0_4 = arith.constant 0 : index
    %4 = vector.load %arg3[%c0_3, %c0_4] : memref<1x1152xf32, #tpu.memory_space<vmem>>, vector<1x1152xf32>
    %5 = vector.broadcast %4 : vector<1x1152xf32> to vector<8x1152xf32>
    %6 = arith.addf %3, %5 : vector<8x1152xf32>
    %7 = vector.extract_strided_slice %6 {offsets = [0, 0], sizes = [8, 384], strides = [1, 1]} : vector<8x1152xf32> to vector<8x384xf32>
    %8 = vector.extract_strided_slice %6 {offsets = [0, 384], sizes = [8, 384], strides = [1, 1]} : vector<8x1152xf32> to vector<8x384xf32>
    %9 = arith.maximumf %7, %8 : vector<8x384xf32>
    %10 = vector.extract_strided_slice %6 {offsets = [0, 768], sizes = [8, 384], strides = [1, 1]} : vector<8x1152xf32> to vector<8x384xf32>
    %11 = arith.maximumf %9, %10 : vector<8x384xf32>
    %cst_5 = arith.constant 0.000000e+00 : f32
    %12 = vector.broadcast %cst_5 : f32 to vector<8x384xf32>
    %13 = arith.maximumf %11, %12 : vector<8x384xf32>
    %14 = arith.truncf %13 : vector<8x384xf32> to vector<8x384xbf16>
    %c0_6 = arith.constant 0 : index
    %c0_7 = arith.constant 0 : index
    %15 = vector.load %arg4[%c0_6, %c0_7] : memref<384x768xbf16, #tpu.memory_space<vmem>>, vector<384x768xbf16>
    %cst_8 = arith.constant dense<0.000000e+00> : vector<8x768xf32>
    %16 = tpu.matmul %14, %15, %cst_8 {dimension_numbers = #tpu.dot_dimension_numbers<[1], [0], [0], [1], [0, 0, 1, 1], [], []>} : vector<8x384xbf16>, vector<384x768xbf16>, vector<8x768xf32> -> vector<8x768xf32>
    %c0_9 = arith.constant 0 : index
    %c0_10 = arith.constant 0 : index
    %17 = vector.load %arg5[%c0_9, %c0_10] : memref<1x768xf32, #tpu.memory_space<vmem>>, vector<1x768xf32>
    %18 = vector.broadcast %17 : vector<1x768xf32> to vector<8x768xf32>
    %19 = arith.addf %16, %18 : vector<8x768xf32>
    %20 = vector.extract_strided_slice %19 {offsets = [0, 0], sizes = [8, 256], strides = [1, 1]} : vector<8x768xf32> to vector<8x256xf32>
    %21 = vector.extract_strided_slice %19 {offsets = [0, 256], sizes = [8, 256], strides = [1, 1]} : vector<8x768xf32> to vector<8x256xf32>
    %22 = arith.maximumf %20, %21 : vector<8x256xf32>
    %23 = vector.extract_strided_slice %19 {offsets = [0, 512], sizes = [8, 256], strides = [1, 1]} : vector<8x768xf32> to vector<8x256xf32>
    %24 = arith.maximumf %22, %23 : vector<8x256xf32>
    %cst_11 = arith.constant 0.000000e+00 : f32
    %25 = vector.broadcast %cst_11 : f32 to vector<8x256xf32>
    %26 = arith.maximumf %24, %25 : vector<8x256xf32>
    %27 = arith.truncf %26 : vector<8x256xf32> to vector<8x256xbf16>
    %c0_12 = arith.constant 0 : index
    %c0_13 = arith.constant 0 : index
    %28 = vector.load %arg6[%c0_12, %c0_13] : memref<256x128xbf16, #tpu.memory_space<vmem>>, vector<256x128xbf16>
    %cst_14 = arith.constant dense<0.000000e+00> : vector<8x128xf32>
    %29 = tpu.matmul %27, %28, %cst_14 {dimension_numbers = #tpu.dot_dimension_numbers<[1], [0], [0], [1], [0, 0, 1, 1], [], []>} : vector<8x256xbf16>, vector<256x128xbf16>, vector<8x128xf32> -> vector<8x128xf32>
    %c0_15 = arith.constant 0 : index
    %c0_16 = arith.constant 0 : index
    %30 = vector.load %arg7[%c0_15, %c0_16] : memref<1x128xf32, #tpu.memory_space<vmem>>, vector<1x128xf32>
    %31 = vector.broadcast %30 : vector<1x128xf32> to vector<8x128xf32>
    %32 = arith.addf %29, %31 : vector<8x128xf32>
    %cst_17 = arith.constant 0.000000e+00 : f32
    %33 = vector.broadcast %cst_17 : f32 to vector<8x128xf32>
    %34 = arith.maximumf %32, %33 : vector<8x128xf32>
    %c0_18 = arith.constant 0 : index
    %c0_19 = arith.constant 0 : index
    %35 = vector.load %arg8[%c0_18, %c0_19] : memref<8x128xf32, #tpu.memory_space<vmem>>, vector<8x128xf32>
    tpu.vector_store %arg8[%c0_18, %c0_19], %34 {strides = array<i32>} : memref<8x128xf32, #tpu.memory_space<vmem>>, vector<8x128xf32>,
    return
  }
  func.func @transform_0(%arg0: i32) -> (i32, i32) {
    %c0_i32 = arith.constant 0 : i32
    %c0_i32_0 = arith.constant 0 : i32
    return %arg0, %c0_i32 : i32, i32
  }
  func.func @transform_1(%arg0: i32) -> (i32, i32) {
    %c0_i32 = arith.constant 0 : i32
    %c0_i32_0 = arith.constant 0 : i32
    %c0_i32_1 = arith.constant 0 : i32
    return %c0_i32, %c0_i32_0 : i32, i32
  }
  func.func @transform_2(%arg0: i32) -> (i32, i32) {
    %c0_i32 = arith.constant 0 : i32
    %c0_i32_0 = arith.constant 0 : i32
    %c0_i32_1 = arith.constant 0 : i32
    return %c0_i32, %c0_i32_0 : i32, i32
  }
  func.func @transform_3(%arg0: i32) -> (i32, i32) {
    %c0_i32 = arith.constant 0 : i32
    %c0_i32_0 = arith.constant 0 : i32
    %c0_i32_1 = arith.constant 0 : i32
    return %c0_i32, %c0_i32_0 : i32, i32
  }
  func.func @transform_4(%arg0: i32) -> (i32, i32) {
    %c0_i32 = arith.constant 0 : i32
    %c0_i32_0 = arith.constant 0 : i32
    %c0_i32_1 = arith.constant 0 : i32
    return %c0_i32, %c0_i32_0 : i32, i32
  }
  func.func @transform_5(%arg0: i32) -> (i32, i32) {
    %c0_i32 = arith.constant 0 : i32
    %c0_i32_0 = arith.constant 0 : i32
    %c0_i32_1 = arith.constant 0 : i32
    return %c0_i32, %c0_i32_0 : i32, i32
  }
  func.func @transform_6(%arg0: i32) -> (i32, i32) {
    %c0_i32 = arith.constant 0 : i32
    %c0_i32_0 = arith.constant 0 : i32
    %c0_i32_1 = arith.constant 0 : i32
    return %c0_i32, %c0_i32_0 : i32, i32
  }
  func.func @transform_7(%arg0: i32) -> (i32, i32) {
    %c0_i32 = arith.constant 0 : i32
    %c0_i32_0 = arith.constant 0 : i32
    return %arg0, %c0_i32 : i32, i32
  }
}

</mosaic_0001>

<bundles_post_ra>
// kernel: mlrp_forward_pallas.1
= control target key start
LH: loop header
LB: loop body
LE: loop exit
PB: predicated region body
PF: predicated region fallthrough
CT: control target
= control target key end

     0   :  { %12 = vsyncpa [#allocation3], 0  ;;  %s3451_s0 = inlined_call_operand.vmem [shape: f32[8,216], index: 0, kind: input, shape index: {}]   ;;  %s3452_s1 = inlined_call_operand.hbm [shape: bf16[216,1152], index: 1, kind: input, shape index: {}]   ;;  %s3453_s2 = inlined_call_operand.vmem [shape: f32[1,1152], index: 2, kind: input, shape index: {}]   ;;  %s3454_s3 = inlined_call_operand.hbm [shape: bf16[384,768], index: 3, kind: input, shape index: {}]   ;;  %s3455_s4 = inlined_call_operand.vmem [shape: f32[1,768], index: 4, kind: input, shape index: {}]   ;;  %s3456_s5 = inlined_call_operand.hbm [shape: bf16[256,128], index: 5, kind: input, shape index: {}]   ;;  %s3457_s6 = inlined_call_operand.vmem [shape: f32[1,128], index: 6, kind: input, shape index: {}]   ;;  %s3458_s7 = inlined_call_operand.vmem [shape: f32[8,128], index: 7, kind: output, shape index: {}]  }
   0x1   :  { %13 = vsyncpa [#allocation5], 0  ;;  %s3261_s24 = smov [#allocation4]  }
   0x2   :  { %s35_s25 = sshll.u32 %s3261_s24, 4  ;;  %s36_s25 = int_to_ptr.vmem [resolvable:$true] %s35_s25 }
   0x3   :  { %s3205_s26 = scalar_lea.vmem %s36_s25, 18432  ;;  %p3210_p1 = scmp.lt.s32.totalorder %s36_s25, %s36_s25 }
   0x4   :  { %p3206_p0 = scmp.ne.s32.totalorder %s36_s25, %s3205_s26  ;;  %p3211_p2 = scmp.lt.s32.totalorder %s3205_s26, %s3205_s26 }
   0x6   :  { %p3212_p3 = por %p3211_p2, %p3210_p1 }
   0x8   :  { %p3213_p4 = pnand %p3212_p3, %p3206_p0 }
   0xa   :  { %3216 = shalt.err (!%p3213_p4)
}
   0xb   :  { %s3262_s27 = smov 384   ;;  %s3263_s28 = smov 24  }
   0xc   :  { %41 = dma.hbm_to_vmem [thread:$0]  %s3454_s3, 18432, %s36_s25, [#allocation5], %s3262_s27, %s3262_s27, %s3263_s28  }
   0xd   :  { %s3264_s8 = smov [#allocation2]  }
   0xe   :  { %s21_s9 = sshll.u32 %s3264_s8, 4  ;;  %s22_s9 = int_to_ptr.vmem [resolvable:$true] %s21_s9 }
   0xf   :  { %s3225_s10 = scalar_lea.vmem %s22_s9, 15552  ;;  %p3230_p6 = scmp.lt.s32.totalorder %s22_s9, %s22_s9 }
  0x10   :  { %p3226_p5 = scmp.ne.s32.totalorder %s22_s9, %s3225_s10  ;;  %p3231_p7 = scmp.lt.s32.totalorder %s3225_s10, %s3225_s10 }
  0x12   :  { %p3232_p8 = por %p3231_p7, %p3230_p6 }
  0x14   :  { %p3233_p9 = pnand %p3232_p8, %p3226_p5 }
  0x16   :  { %3236 = shalt.err (!%p3233_p9)
}
  0x17   :  { %s3265_s11 = smov 576   ;;  %s3266_s12 = smov 36  }
  0x18   :  { %27 = dma.hbm_to_vmem [thread:$0]  %s3452_s1, 15552, %s22_s9, [#allocation3], %s3265_s11, %s3265_s11, %s3266_s12  }
  0x19   :  { %s3267_s15 = smov [#allocation6]  }
  0x1a   :  { %s49_s16 = sshll.u32 %s3267_s15, 4  ;;  %s50_s16 = int_to_ptr.vmem [resolvable:$true] %s49_s16 }
  0x1b   :  { %s3245_s3 = scalar_lea.vmem %s50_s16, 2048  ;;  %p3250_p11 = scmp.lt.s32.totalorder %s50_s16, %s50_s16 }
  0x1c   :  { %p3246_p10 = scmp.ne.s32.totalorder %s50_s16, %s3245_s3  ;;  %p3251_p12 = scmp.lt.s32.totalorder %s3245_s3, %s3245_s3 }
  0x1e   :  { %p3252_p13 = por %p3251_p12, %p3250_p11 }
  0x20   :  { %p3253_p0 = pnand %p3252_p13, %p3246_p10 }
  0x22   :  { %3256 = shalt.err (!%p3253_p0)
}
  0x23   :  { %s3268_s17 = smov 64   ;;  %s3269_s18 = smov 4  }
  0x24   :  { %55 = dma.hbm_to_vmem [thread:$0]  %s3456_s5, 2048, %s50_s16, [#allocation5], %s3268_s17, %s3268_s17, %s3269_s18  }
  0x25   :  { %3257 = dma.done.wait [#allocation3], 15552  }
  0x26   :  { %3258 = vsyncadd [#allocation3], 4294951744 }
  0x27   :  { %3259 = dma.done.wait [#allocation5], 20480  }
  0x28   :  { %3260 = vsyncadd [#allocation5], 4294946816  ;;  %v2787_v0 = vld [vmem:[#allocation2 + $0x1fc] ss:$36 sps:$4 sm:$0xff]   ;;  %v2789_v1 = vld [vmem:[#allocation2 + $0x204] ss:$36 sps:$4 sm:$0xff]  }
  0x29   :  { %909 = vmatprep.subr.bf16.mxu0 %v2787_v0  ;;  %v2791_v2 = vld [vmem:[#allocation2 + $0x1f8] ss:$36 sps:$4 sm:$0xff]   ;;  %v2792_v3 = vld [vmem:[#allocation2 + $0x200] ss:$36 sps:$4 sm:$0xff]   ;;  %950 = vmatprep.subr.bf16.mxu1 %v2789_v1  ;;  %v2797_v6 = vld [vmem:[#allocation2 + $0x1b0] ss:$36 sps:$4 sm:$0xff]  }
  0x2a   :  { %v2793_v4 = vld [vmem:[#allocation2 + $0x1b4] ss:$36 sps:$4 sm:$0xff]   ;;  %910 = vmatpush1.bf16.msra.mxu0 %v2791_v2  ;;  %951 = vmatpush1.bf16.msra.mxu1 %v2792_v3  ;;  %v2795_v5 = vld [vmem:[#allocation2 + $0x1bc] ss:$36 sps:$4 sm:$0xff]   ;;  %v2799_v8 = vld [vmem:[#allocation2 + $0x16c] ss:$36 sps:$4 sm:$0xff]  }
  0x2b   :  { %911 = vmatprep.subr.bf16.mxu0 %v2793_v4  ;;  %v2798_v7 = vld [vmem:[#allocation2 + $0x1b8] ss:$36 sps:$4 sm:$0xff]   ;;  %952 = vmatprep.subr.bf16.mxu1 %v2795_v5  ;;  %v2803_v10 = vld [vmem:[#allocation2 + $0x168] ss:$36 sps:$4 sm:$0xff]   ;;  %v2804_v11 = vld [vmem:[#allocation2 + $0x170] ss:$36 sps:$4 sm:$0xff]  }
  0x2c   :  { %v2801_v9 = vld [vmem:[#allocation2 + $0x174] ss:$36 sps:$4 sm:$0xff]   ;;  %v2805_v12 = vld [vmem:[#allocation2 + $0x124] ss:$36 sps:$4 sm:$0xff]   ;;  %v2807_v13 = vld [vmem:[#allocation2 + $0x12c] ss:$36 sps:$4 sm:$0xff]  }
  0x2d   :  { %v2809_v14 = vld [vmem:[#allocation2 + $0x120] ss:$36 sps:$4 sm:$0xff]   ;;  %v2810_v15 = vld [vmem:[#allocation2 + $0x128] ss:$36 sps:$4 sm:$0xff]   ;;  %v2815_v18 = vld [vmem:[#allocation2 + $0xd8] ss:$36 sps:$4 sm:$0xff]  }
  0x2e   :  { %912 = vmatpush1.bf16.msra.mxu0 %v2797_v6  ;;  %953 = vmatpush1.bf16.msra.mxu1 %v2798_v7  ;;  %v2811_v16 = vld [vmem:[#allocation2 + $0xdc] ss:$36 sps:$4 sm:$0xff]   ;;  %v2813_v17 = vld [vmem:[#allocation2 + $0xe4] ss:$36 sps:$4 sm:$0xff]   ;;  %v2817_v20 = vld [vmem:[#allocation2 + $0x94] ss:$36 sps:$4 sm:$0xff]  }
  0x2f   :  { %913 = vmatprep.subr.bf16.mxu0 %v2799_v8  ;;  %954 = vmatprep.subr.bf16.mxu1 %v2801_v9  ;;  %v2816_v19 = vld [vmem:[#allocation2 + $0xe0] ss:$36 sps:$4 sm:$0xff]   ;;  %v2821_v22 = vld [vmem:[#allocation2 + $0x90] ss:$36 sps:$4 sm:$0xff]   ;;  %v2822_v23 = vld [vmem:[#allocation2 + $0x98] ss:$36 sps:$4 sm:$0xff]  }
  0x30   :  { %v2819_v21 = vld [vmem:[#allocation2 + $0x9c] ss:$36 sps:$4 sm:$0xff]   ;;  %v2823_v24 = vld [vmem:[#allocation2 + $0x4c] ss:$36 sps:$4 sm:$0xff]   ;;  %v2825_v25 = vld [vmem:[#allocation2 + $0x54] ss:$36 sps:$4 sm:$0xff]  }
  0x31   :  { %v2827_v26 = vld [vmem:[#allocation2 + $0x48] ss:$36 sps:$4 sm:$0xff]   ;;  %v2828_v27 = vld [vmem:[#allocation2 + $0x50] ss:$36 sps:$4 sm:$0xff]   ;;  %v2833_v32 = vld [vmem:[#allocation2] ss:$36 sps:$4 sm:$0xff]  }
  0x32   :  { %914 = vmatpush1.bf16.msra.mxu0 %v2803_v10  ;;  %955 = vmatpush1.bf16.msra.mxu1 %v2804_v11  ;;  %v2829_v28 = vld [vmem:[#allocation2 + $0x4] ss:$36 sps:$4 sm:$0xff]   ;;  %v2831_v29 = vld [vmem:[#allocation2 + $0xc] ss:$36 sps:$4 sm:$0xff]   ;;  %vm881_vm0 = vcmask 1043456   ;;  %vm877_vm1 = vcmask 719872  }
  0x33   :  { %915 = vmatprep.subr.bf16.mxu0 %v2805_v12  ;;  %956 = vmatprep.subr.bf16.mxu1 %v2807_v13  ;;  %v202_v30 = vld [vmem:[#allocation2 + $0x3a8] sm:$0xff]  ;;  %v203_v31 = vld [vmem:[#allocation2 + $0x3b0] sm:$0xff]  ;;  %v2843_v42 = vld [vmem:[#allocation2 + $0x360] ss:$36 sps:$4 sm:$0xff]  }
  0x34   :  { %v2834_v33 = vld [vmem:[#allocation2 + $0x8] ss:$36 sps:$4 sm:$0xff]   ;;  %v2577_v34 = vcombine.high %v202_v30, %v202_v30  ;;  %v2579_v35 = vcombine.high %v203_v31, %v203_v31  ;;  %v2576_v36 = vcombine.low %v202_v30, %v202_v30  ;;  %v2578_v37 = vcombine.low %v203_v31, %v203_v31  ;;  %v2845_v46 = vld [vmem:[#allocation2 + $0x31c] ss:$36 sps:$4 sm:$0xff]   ;;  %v2851_v50 = vld [vmem:[#allocation2 + $0x2d4] ss:$36 sps:$4 sm:$0xff]  }
  0x35   :  { %v2839_v38 = vld [vmem:[#allocation2 + $0x364] ss:$36 sps:$4 sm:$0xff]   ;;  %v2841_v41 = vld [vmem:[#allocation2 + $0x36c] ss:$36 sps:$4 sm:$0xff]   ;;  %v2849_v48 = vld [vmem:[#allocation2 + $0x318] ss:$36 sps:$4 sm:$0xff]  }
  0x36   :  { %916 = vmatpush1.bf16.msra.mxu0 %v2809_v14  ;;  %957 = vmatpush1.bf16.msra.mxu1 %v2810_v15  ;;  %v883_v39 = vsel %vm881_vm0, %v2576_v36, 0  ;;  %v889_v40 = vsel %vm881_vm0, %v2578_v37, 0  ;;  %v69_v43 = vld [vmem:[%s3451_s0 + $0x8] sm:$0xff]  ;;  %v2850_v49 = vld [vmem:[#allocation2 + $0x320] ss:$36 sps:$4 sm:$0xff]   ;;  %v204_v30 = vld [vmem:[#allocation2 + $0x3b8] sm:$0xff] }
  0x37   :  { %917 = vmatprep.subr.bf16.mxu0 %v2811_v16  ;;  %958 = vmatprep.subr.bf16.mxu1 %v2813_v17  ;;  %v2844_v44 = vld [vmem:[#allocation2 + $0x368] ss:$36 sps:$4 sm:$0xff]   ;;  %v3327_v45 = vpack.c.bf16 %v69_v43, %v69_v43  ;;  %v2853_v51 = vld [vmem:[#allocation2 + $0x2dc] ss:$36 sps:$4 sm:$0xff]   ;;  %v2855_v52 = vld [vmem:[#allocation2 + $0x2d0] ss:$36 sps:$4 sm:$0xff]   ;;  %v2580_v36 = vcombine.low %v204_v30, %v204_v30 }
  0x38   :  { %v2847_v47 = vld [vmem:[#allocation2 + $0x324] ss:$36 sps:$4 sm:$0xff]   ;;  %v2856_v53 = vld [vmem:[#allocation2 + $0x2d8] ss:$36 sps:$4 sm:$0xff]   ;;  %v2857_v54 = vld [vmem:[#allocation2 + $0x28c] ss:$36 sps:$4 sm:$0xff]  }
  0x39   :  { %2586 = vmatprep.mubr.msk.bf16.mxu0 %vm877_vm1, %v3327_v45  ;;  %2588 = vmatprep.mubr.msk.bf16.mxu1 %vm877_vm1, %v3327_v45  ;;  %v2859_v55 = vld [vmem:[#allocation2 + $0x294] ss:$36 sps:$4 sm:$0xff]   ;;  %v2861_v56 = vld [vmem:[#allocation2 + $0x288] ss:$36 sps:$4 sm:$0xff]   ;;  %v2867_v60 = vld [vmem:[#allocation2 + $0x240] ss:$36 sps:$4 sm:$0xff]  }
  0x3a   :  { %918 = vmatpush1.bf16.msra.mxu0 %v2815_v18  ;;  %959 = vmatpush1.bf16.msra.mxu1 %v2816_v19  ;;  %v2862_v57 = vld [vmem:[#allocation2 + $0x290] ss:$36 sps:$4 sm:$0xff]   ;;  %v2863_v58 = vld [vmem:[#allocation2 + $0x244] ss:$36 sps:$4 sm:$0xff]   ;;  %v2883_v8 = vld [vmem:[#allocation2 + $0x17c] ss:$36 sps:$4 sm:$0xff]  }
  0x3b   :  { %919 = vmatprep.subr.bf16.mxu0 %v2817_v20  ;;  %960 = vmatprep.subr.bf16.mxu1 %v2819_v21  ;;  %v2865_v59 = vld [vmem:[#allocation2 + $0x24c] ss:$36 sps:$4 sm:$0xff]   ;;  %v68_v62 = vld [vmem:[%s3451_s0] sm:$0xff]  ;;  %v2874_v0 = vld [vmem:[#allocation2 + $0x214] ss:$36 sps:$4 sm:$0xff]  }
  0x3c   :  { %v2868_v61 = vld [vmem:[#allocation2 + $0x248] ss:$36 sps:$4 sm:$0xff]   ;;  %v3336_v1 = vpack.c.bf16 %v68_v62, %v68_v62  ;;  %v2872_v3 = vld [vmem:[#allocation2 + $0x210] ss:$36 sps:$4 sm:$0xff]   ;;  %v2875_v6 = vld [vmem:[#allocation2 + $0x1c0] ss:$36 sps:$4 sm:$0xff]  }
  0x3d   :  { %v2871_v63 = vld [vmem:[#allocation2 + $0x20c] ss:$36 sps:$4 sm:$0xff]   ;;  %v2877_v4 = vld [vmem:[#allocation2 + $0x1c4] ss:$36 sps:$4 sm:$0xff]   ;;  %v2881_v10 = vld [vmem:[#allocation2 + $0x178] ss:$36 sps:$4 sm:$0xff]  }
  0x3e   :  { %920 = vmatpush1.bf16.msra.mxu0 %v2821_v22  ;;  %961 = vmatpush1.bf16.msra.mxu1 %v2822_v23  ;;  %v2869_v2 = vld [vmem:[#allocation2 + $0x208] ss:$36 sps:$4 sm:$0xff]   ;;  %v2884_v11 = vld [vmem:[#allocation2 + $0x180] ss:$36 sps:$4 sm:$0xff]   ;;  %v2889_v12 = vld [vmem:[#allocation2 + $0x134] ss:$36 sps:$4 sm:$0xff]  }
  0x3f   :  { %921 = vmatprep.subr.bf16.mxu0 %v2823_v24  ;;  %962 = vmatprep.subr.bf16.mxu1 %v2825_v25  ;;  %v2880_v5 = vld [vmem:[#allocation2 + $0x1cc] ss:$36 sps:$4 sm:$0xff]   ;;  %v2886_v9 = vld [vmem:[#allocation2 + $0x184] ss:$36 sps:$4 sm:$0xff]   ;;  %v2892_v13 = vld [vmem:[#allocation2 + $0x13c] ss:$36 sps:$4 sm:$0xff]  }
  0x40   :  { %v2878_v7 = vld [vmem:[#allocation2 + $0x1c8] ss:$36 sps:$4 sm:$0xff]   ;;  %v2887_v14 = vld [vmem:[#allocation2 + $0x130] ss:$36 sps:$4 sm:$0xff]   ;;  %v2890_v15 = vld [vmem:[#allocation2 + $0x138] ss:$36 sps:$4 sm:$0xff]  }
  0x41   :  { %v2895_v16 = vld [vmem:[#allocation2 + $0xec] ss:$36 sps:$4 sm:$0xff]   ;;  %v2898_v17 = vld [vmem:[#allocation2 + $0xf4] ss:$36 sps:$4 sm:$0xff]   ;;  %v2901_v20 = vld [vmem:[#allocation2 + $0xa4] ss:$36 sps:$4 sm:$0xff]  }
  0x42   :  { %922 = vmatpush1.bf16.msra.mxu0 %v2827_v26  ;;  %963 = vmatpush1.bf16.msra.mxu1 %v2828_v27  ;;  %v2893_v18 = vld [vmem:[#allocation2 + $0xe8] ss:$36 sps:$4 sm:$0xff]   ;;  %v2896_v19 = vld [vmem:[#allocation2 + $0xf0] ss:$36 sps:$4 sm:$0xff]   ;;  %v2899_v22 = vld [vmem:[#allocation2 + $0xa0] ss:$36 sps:$4 sm:$0xff]  }
  0x43   :  { %923 = vmatprep.subr.bf16.mxu0 %v2829_v28  ;;  %964 = vmatprep.subr.bf16.mxu1 %v2831_v29  ;;  %v2904_v21 = vld [vmem:[#allocation2 + $0xac] ss:$36 sps:$4 sm:$0xff]   ;;  %v2907_v24 = vld [vmem:[#allocation2 + $0x5c] ss:$36 sps:$4 sm:$0xff]   ;;  %v2910_v25 = vld [vmem:[#allocation2 + $0x64] ss:$36 sps:$4 sm:$0xff]  }
  0x44   :  { %v2902_v23 = vld [vmem:[#allocation2 + $0xa8] ss:$36 sps:$4 sm:$0xff]   ;;  %v2905_v26 = vld [vmem:[#allocation2 + $0x58] ss:$36 sps:$4 sm:$0xff]   ;;  %v2908_v27 = vld [vmem:[#allocation2 + $0x60] ss:$36 sps:$4 sm:$0xff]  }
  0x45   :  { %v2913_v28 = vld [vmem:[#allocation2 + $0x14] ss:$36 sps:$4 sm:$0xff]   ;;  %v2916_v29 = vld [vmem:[#allocation2 + $0x1c] ss:$36 sps:$4 sm:$0xff]   ;;  %v3270_v62 = vmov 0  }
  0x46   :  { %924 = vmatpush1.bf16.msra.mxu0 %v2833_v32  ;;  %965 = vmatpush1.bf16.msra.mxu1 %v2834_v33  ;;  %v205_v31 = vld [vmem:[#allocation2 + $0x3c0] sm:$0xff]  ;;  %v2911_v32 = vld [vmem:[#allocation2 + $0x10] ss:$36 sps:$4 sm:$0xff]   ;;  %v2914_v33 = vld [vmem:[#allocation2 + $0x18] ss:$36 sps:$4 sm:$0xff]  }
  0x47   :  { %2585 = vmatprep.subr.msk.bf16.mxu0 %vm881_vm0, %v2577_v34  ;;  %2587 = vmatprep.subr.msk.bf16.mxu1 %vm881_vm0, %v2579_v35  ;;  %v2581_v34 = vcombine.high %v204_v30, %v204_v30  ;;  %v2583_v35 = vcombine.high %v205_v31, %v205_v31  ;;  %v2582_v37 = vcombine.low %v205_v31, %v205_v31  ;;  %v2924_v43 = vld [vmem:[#allocation2 + $0x378] ss:$36 sps:$4 sm:$0xff]   ;;  %v2992_v30 = vld [vmem:[#allocation4 + $0x2a0] ss:$24 sps:$4 sm:$0xff]  }
  0x48   :  { %v2963_v31 = vld [vmem:[#allocation2 + $0x2a8] ss:$36 sps:$4 sm:$0xff]  }
  0x4a   :  { %930 = vmatpush2.bf16.msra.mxu0 %v883_v39  ;;  %971 = vmatpush2.bf16.msra.mxu1 %v889_v40  ;;  %v2926_v39 = vld [vmem:[#allocation2 + $0x37c] ss:$36 sps:$4 sm:$0xff]   ;;  %v895_v40 = vsel %vm881_vm0, %v2580_v36, 0  ;;  %v2998_v36 = vld [vmem:[#allocation4 + $0x240] ss:$24 sps:$4 sm:$0xff]  }
  0x4b   :  { %931 = vmatprep.subr.bf16.mxu0 %v2839_v38  ;;  %972 = vmatprep.subr.bf16.mxu1 %v2841_v41  ;;  %v2923_v38 = vld [vmem:[#allocation2 + $0x374] ss:$36 sps:$4 sm:$0xff]   ;;  %v901_v41 = vsel %vm881_vm0, %v2582_v37, 0 }
  0x4c   :  { %v3003_v37 = vld [vmem:[#allocation4 + $0x214] ss:$24 sps:$4 sm:$0xff]  }
  0x4e   :  { %932 = vmatpush2.bf16.msra.mxu0 %v2843_v42  ;;  %973 = vmatpush2.bf16.msra.mxu1 %v2844_v44  ;;  %v2921_v42 = vld [vmem:[#allocation2 + $0x370] ss:$36 sps:$4 sm:$0xff]  }
  0x4f   :  { %933 = vmatprep.subr.bf16.mxu0 %v2845_v46  ;;  %974 = vmatprep.subr.bf16.mxu1 %v2847_v47  ;;  %v2929_v44 = vld [vmem:[#allocation2 + $0x32c] ss:$36 sps:$4 sm:$0xff]   ;;  %v2932_v46 = vld [vmem:[#allocation2 + $0x334] ss:$36 sps:$4 sm:$0xff]  }
  0x50   :  { %v2927_v47 = vld [vmem:[#allocation2 + $0x328] ss:$36 sps:$4 sm:$0xff]  }
  0x52   :  { %934 = vmatpush2.bf16.msra.mxu0 %v2849_v48  ;;  %975 = vmatpush2.bf16.msra.mxu1 %v2850_v49  ;;  %v2930_v48 = vld [vmem:[#allocation2 + $0x330] ss:$36 sps:$4 sm:$0xff]   ;;  %v2935_v49 = vld [vmem:[#allocation2 + $0x2e4] ss:$36 sps:$4 sm:$0xff]  }
  0x53   :  { %935 = vmatprep.subr.bf16.mxu0 %v2851_v50  ;;  %976 = vmatprep.subr.bf16.mxu1 %v2853_v51  ;;  %v2938_v50 = vld [vmem:[#allocation2 + $0x2ec] ss:$36 sps:$4 sm:$0xff]   ;;  %v2933_v51 = vld [vmem:[#allocation2 + $0x2e0] ss:$36 sps:$4 sm:$0xff]  }
  0x56   :  { %936 = vmatpush2.bf16.msra.mxu0 %v2855_v52  ;;  %977 = vmatpush2.bf16.msra.mxu1 %v2856_v53  ;;  %v2936_v52 = vld [vmem:[#allocation2 + $0x2e8] ss:$36 sps:$4 sm:$0xff]   ;;  %v2941_v53 = vld [vmem:[#allocation2 + $0x29c] ss:$36 sps:$4 sm:$0xff]  }
  0x57   :  { %937 = vmatprep.subr.bf16.mxu0 %v2857_v54  ;;  %978 = vmatprep.subr.bf16.mxu1 %v2859_v55  ;;  %v2944_v54 = vld [vmem:[#allocation2 + $0x2a4] ss:$36 sps:$4 sm:$0xff]   ;;  %v2939_v55 = vld [vmem:[#allocation2 + $0x298] ss:$36 sps:$4 sm:$0xff]  }
  0x5a   :  { %938 = vmatpush2.bf16.msra.mxu0 %v2861_v56  ;;  %979 = vmatpush2.bf16.msra.mxu1 %v2862_v57  ;;  %v2942_v56 = vld [vmem:[#allocation2 + $0x2a0] ss:$36 sps:$4 sm:$0xff]   ;;  %v2947_v57 = vld [vmem:[#allocation2 + $0x254] ss:$36 sps:$4 sm:$0xff]  }
  0x5b   :  { %939 = vmatprep.subr.bf16.mxu0 %v2863_v58  ;;  %980 = vmatprep.subr.bf16.mxu1 %v2865_v59  ;;  %v2950_v58 = vld [vmem:[#allocation2 + $0x25c] ss:$36 sps:$4 sm:$0xff]   ;;  %v2945_v59 = vld [vmem:[#allocation2 + $0x250] ss:$36 sps:$4 sm:$0xff]  }
  0x5e   :  { %940 = vmatpush2.bf16.msra.mxu0 %v2867_v60  ;;  %981 = vmatpush2.bf16.msra.mxu1 %v2868_v61  ;;  %v2948_v60 = vld [vmem:[#allocation2 + $0x258] ss:$36 sps:$4 sm:$0xff]  }
  0x5f   :  { %991 = vmatprep.subr.bf16.mxu0 %v2871_v63  ;;  %1032 = vmatprep.subr.bf16.mxu1 %v2874_v0  ;;  %v2951_v61 = vld [vmem:[#allocation2 + $0x218] ss:$36 sps:$4 sm:$0xff]   ;;  %v2952_v63 = vld [vmem:[#allocation2 + $0x1d0] ss:$36 sps:$4 sm:$0xff]   ;;  %v2953_v0 = vld [vmem:[#allocation2 + $0x188] ss:$36 sps:$4 sm:$0xff]  }
  0x61   :  { %942 = vmatmul.mubr.bf16.vlgmr.msra.gmra.mxu0 %v3336_v1  ;;  %983 = vmatmul.mubr.bf16.vlgmr.msra.gmra.mxu1 %v3336_v1 }
  0x62   :  { %992 = vmatpush1.bf16.msra.mxu0 %v2869_v2  ;;  %1033 = vmatpush1.bf16.msra.mxu1 %v2872_v3  ;;  %v2954_v2 = vld [vmem:[#allocation2 + $0x140] ss:$36 sps:$4 sm:$0xff]  }
  0x63   :  { %993 = vmatprep.subr.bf16.mxu0 %v2877_v4  ;;  %1034 = vmatprep.subr.bf16.mxu1 %v2880_v5  ;;  %v2967_v3 = vld [vmem:[#allocation4 + $0x154] ss:$24 sps:$4 sm:$0xff]   ;;  %v2965_v4 = vld [vmem:[#allocation4 + $0x150] ss:$24 sps:$4 sm:$0xff]  }
  0x64   :  { %2590 = vmatprep.mubr.msk.bf16.mxu0 %vm877_vm1, %v3327_v45  ;;  %2592 = vmatprep.mubr.msk.bf16.mxu1 %vm877_vm1, %v3327_v45  ;;  %v2955_v5 = vld [vmem:[#allocation2 + $0xf8] ss:$36 sps:$4 sm:$0xff]  }
  0x66   :  { %994 = vmatpush1.bf16.msra.mxu0 %v2875_v6  ;;  %1035 = vmatpush1.bf16.msra.mxu1 %v2878_v7  ;;  %v2970_v6 = vld [vmem:[#allocation4 + $0x124] ss:$24 sps:$4 sm:$0xff]   ;;  %v2973_v7 = vld [vmem:[#allocation4 + $0xf4] ss:$24 sps:$4 sm:$0xff]  }
  0x67   :  { %995 = vmatprep.subr.bf16.mxu0 %v2883_v8  ;;  %1036 = vmatprep.subr.bf16.mxu1 %v2886_v9  ;;  %v2971_v8 = vld [vmem:[#allocation4 + $0xf0] ss:$24 sps:$4 sm:$0xff]  }
  0x68   :  { %v2956_v9 = vld [vmem:[#allocation2 + $0xb0] ss:$36 sps:$4 sm:$0xff]  }
  0x6a   :  { %996 = vmatpush1.bf16.msra.mxu0 %v2881_v10  ;;  %1037 = vmatpush1.bf16.msra.mxu1 %v2884_v11  ;;  %v2976_v10 = vld [vmem:[#allocation4 + $0xc4] ss:$24 sps:$4 sm:$0xff]   ;;  %v2974_v11 = vld [vmem:[#allocation4 + $0xc0] ss:$24 sps:$4 sm:$0xff]  }
  0x6b   :  { %997 = vmatprep.subr.bf16.mxu0 %v2889_v12  ;;  %1038 = vmatprep.subr.bf16.mxu1 %v2892_v13  ;;  %v2957_v12 = vld [vmem:[#allocation2 + $0x68] ss:$36 sps:$4 sm:$0xff]  }
  0x6c   :  { %v2959_v13 = vld [vmem:[#allocation2 + $0x3c8] ss:$0 sps:$4 sm:$0xff]  }
  0x6e   :  { %998 = vmatpush1.bf16.msra.mxu0 %v2887_v14  ;;  %1039 = vmatpush1.bf16.msra.mxu1 %v2890_v15  ;;  %v2979_v14 = vld [vmem:[#allocation4 + $0x94] ss:$24 sps:$4 sm:$0xff]   ;;  %v2977_v15 = vld [vmem:[#allocation4 + $0x90] ss:$24 sps:$4 sm:$0xff]  }
  0x6f   :  { %999 = vmatprep.subr.bf16.mxu0 %v2895_v16  ;;  %1040 = vmatprep.subr.bf16.mxu1 %v2898_v17  ;;  %v2958_v16 = vld [vmem:[#allocation2 + $0x20] ss:$36 sps:$4 sm:$0xff]   ;;  %v2982_v17 = vld [vmem:[#allocation4 + $0x64] ss:$24 sps:$4 sm:$0xff]  }
  0x72   :  { %1000 = vmatpush1.bf16.msra.mxu0 %v2893_v18  ;;  %1041 = vmatpush1.bf16.msra.mxu1 %v2896_v19  ;;  %v2980_v18 = vld [vmem:[#allocation4 + $0x60] ss:$24 sps:$4 sm:$0xff]   ;;  %v907_v19 = vsel %vm881_vm0, %v2959_v13, 0 }
  0x73   :  { %1001 = vmatprep.subr.bf16.mxu0 %v2901_v20  ;;  %1042 = vmatprep.subr.bf16.mxu1 %v2904_v21  ;;  %v2985_v20 = vld [vmem:[#allocation4 + $0x34] ss:$24 sps:$4 sm:$0xff]   ;;  %v2983_v21 = vld [vmem:[#allocation4 + $0x30] ss:$24 sps:$4 sm:$0xff]  }
  0x76   :  { %1002 = vmatpush1.bf16.msra.mxu0 %v2899_v22  ;;  %1043 = vmatpush1.bf16.msra.mxu1 %v2902_v23  ;;  %v2960_v22 = vld [vmem:[#allocation2 + $0x380] ss:$36 sps:$4 sm:$0xff]   ;;  %v2988_v23 = vld [vmem:[#allocation4 + $0x4] ss:$24 sps:$4 sm:$0xff]  }
  0x77   :  { %1003 = vmatprep.subr.bf16.mxu0 %v2907_v24  ;;  %1044 = vmatprep.subr.bf16.mxu1 %v2910_v25  ;;  %v2986_v24 = vld [vmem:[#allocation4] ss:$24 sps:$4 sm:$0xff]   ;;  %v2961_v25 = vld [vmem:[#allocation2 + $0x338] ss:$36 sps:$4 sm:$0xff]  }
  0x7a   :  { %1004 = vmatpush1.bf16.msra.mxu0 %v2905_v26  ;;  %1045 = vmatpush1.bf16.msra.mxu1 %v2908_v27  ;;  %v2991_v26 = vld [vmem:[#allocation4 + $0x2d4] ss:$24 sps:$4 sm:$0xff]   ;;  %v2989_v27 = vld [vmem:[#allocation4 + $0x2d0] ss:$24 sps:$4 sm:$0xff]  }
  0x7b   :  { %1005 = vmatprep.subr.bf16.mxu0 %v2913_v28  ;;  %1046 = vmatprep.subr.bf16.mxu1 %v2916_v29  ;;  %v2962_v28 = vld [vmem:[#allocation2 + $0x2f0] ss:$36 sps:$4 sm:$0xff]  }
  0x7c   :  { %v2994_v29 = vld [vmem:[#allocation4 + $0x2a4] ss:$24 sps:$4 sm:$0xff]  }
  0x7e   :  { %1006 = vmatpush1.bf16.msra.mxu0 %v2911_v32  ;;  %1047 = vmatpush1.bf16.msra.mxu1 %v2914_v33  ;;  %v2997_v32 = vld [vmem:[#allocation4 + $0x274] ss:$24 sps:$4 sm:$0xff]   ;;  %v2995_v33 = vld [vmem:[#allocation4 + $0x270] ss:$24 sps:$4 sm:$0xff]  }
  0x7f   :  { %2589 = vmatprep.subr.msk.bf16.mxu0 %vm881_vm0, %v2581_v34  ;;  %2591 = vmatprep.subr.msk.bf16.mxu1 %vm881_vm0, %v2583_v35  ;;  %v2964_v34 = vld [vmem:[#allocation2 + $0x260] ss:$36 sps:$4 sm:$0xff]   ;;  %v3000_v35 = vld [vmem:[#allocation4 + $0x244] ss:$24 sps:$4 sm:$0xff]  }
  0x82   :  { %1012 = vmatpush2.bf16.msra.mxu0 %v895_v40  ;;  %1053 = vmatpush2.bf16.msra.mxu1 %v901_v41  ;;  %v3004_v40 = vld [vmem:[#allocation4 + $0x1e0] ss:$24 sps:$4 sm:$0xff]   ;;  %v3009_v41 = vld [vmem:[#allocation4 + $0x1b4] ss:$24 sps:$4 sm:$0xff]  }
  0x83   :  { %1013 = vmatprep.subr.bf16.mxu0 %v2923_v38  ;;  %1054 = vmatprep.subr.bf16.mxu1 %v2926_v39  ;;  %v3001_v38 = vld [vmem:[#allocation4 + $0x210] ss:$24 sps:$4 sm:$0xff]   ;;  %v3006_v39 = vld [vmem:[#allocation4 + $0x1e4] ss:$24 sps:$4 sm:$0xff]  }
  0x86   :  { %1014 = vmatpush2.bf16.msra.mxu0 %v2921_v42  ;;  %1055 = vmatpush2.bf16.msra.mxu1 %v2924_v43  ;;  %v3007_v42 = vld [vmem:[#allocation4 + $0x1b0] ss:$24 sps:$4 sm:$0xff]   ;;  %v3012_v43 = vld [vmem:[#allocation4 + $0x184] ss:$24 sps:$4 sm:$0xff]  }
  0x87   :  { %1015 = vmatprep.subr.bf16.mxu0 %v2929_v44  ;;  %1056 = vmatprep.subr.bf16.mxu1 %v2932_v46  ;;  %v3010_v44 = vld [vmem:[#allocation4 + $0x180] ss:$24 sps:$4 sm:$0xff]   ;;  %v3015_v46 = vld [vmem:[#allocation4 + $0x15c] ss:$24 sps:$4 sm:$0xff]  }
  0x8a   :  { %1016 = vmatpush2.bf16.msra.mxu0 %v2927_v47  ;;  %1057 = vmatpush2.bf16.msra.mxu1 %v2930_v48  ;;  %v3033_v47 = vld [vmem:[#allocation4 + $0x454] ss:$24 sps:$4 sm:$0xff]   ;;  %v3037_v48 = vld [vmem:[#allocation4 + $0x420] ss:$24 sps:$4 sm:$0xff]  }
  0x8b   :  { %1017 = vmatprep.subr.bf16.mxu0 %v2935_v49  ;;  %1058 = vmatprep.subr.bf16.mxu1 %v2938_v50  ;;  %v3039_v49 = vld [vmem:[#allocation4 + $0x424] ss:$24 sps:$4 sm:$0xff]   ;;  %v3043_v50 = vld [vmem:[#allocation4 + $0x3f0] ss:$24 sps:$4 sm:$0xff]  }
  0x8e   :  { %1018 = vmatpush2.bf16.msra.mxu0 %v2933_v51  ;;  %1059 = vmatpush2.bf16.msra.mxu1 %v2936_v52  ;;  %v3045_v51 = vld [vmem:[#allocation4 + $0x3f4] ss:$24 sps:$4 sm:$0xff]   ;;  %v3049_v52 = vld [vmem:[#allocation4 + $0x3c0] ss:$24 sps:$4 sm:$0xff]  }
  0x8f   :  { %1019 = vmatprep.subr.bf16.mxu0 %v2941_v53  ;;  %1060 = vmatprep.subr.bf16.mxu1 %v2944_v54  ;;  %v3051_v53 = vld [vmem:[#allocation4 + $0x3c4] ss:$24 sps:$4 sm:$0xff]   ;;  %v3055_v54 = vld [vmem:[#allocation4 + $0x390] ss:$24 sps:$4 sm:$0xff]  }
  0x92   :  { %1020 = vmatpush2.bf16.msra.mxu0 %v2939_v55  ;;  %1061 = vmatpush2.bf16.msra.mxu1 %v2942_v56  ;;  %v3057_v55 = vld [vmem:[#allocation4 + $0x394] ss:$24 sps:$4 sm:$0xff]   ;;  %v3061_v56 = vld [vmem:[#allocation4 + $0x360] ss:$24 sps:$4 sm:$0xff]  }
  0x93   :  { %1021 = vmatprep.subr.bf16.mxu0 %v2947_v57  ;;  %1062 = vmatprep.subr.bf16.mxu1 %v2950_v58  ;;  %v3063_v57 = vld [vmem:[#allocation4 + $0x364] ss:$24 sps:$4 sm:$0xff]   ;;  %v3069_v58 = vld [vmem:[#allocation4 + $0x334] ss:$24 sps:$4 sm:$0xff]  }
  0x96   :  { %1022 = vmatpush2.bf16.msra.mxu0 %v2945_v59  ;;  %1063 = vmatpush2.bf16.msra.mxu1 %v2948_v60  ;;  %v3067_v59 = vld [vmem:[#allocation4 + $0x330] ss:$24 sps:$4 sm:$0xff]   ;;  %v3075_v60 = vld [vmem:[#allocation4 + $0x304] ss:$24 sps:$4 sm:$0xff]  }
  0x97   :  { %1073 = vmatprep.subr.bf16.mxu0 %v3270_v62  ;;  %2021 = vmatprep.subr.bf16.mxu1 %v2967_v3 }
  0x99   :  { %1024 = vmatmul.mubr.bf16.vlgmr.msra.gmra.mxu0 %v3336_v1  ;;  %1065 = vmatmul.mubr.bf16.vlgmr.msra.gmra.mxu1 %v3336_v1 }
  0x9a   :  { %1074 = vmatpush1.bf16.msra.mxu0 %v2951_v61  ;;  %2593 = vmatprep.mubr.msk.bf16.mxu0 %vm877_vm1, %v3327_v45  ;;  %v2968_v45 = vld [vmem:[#allocation4 + $0x120] ss:$24 sps:$4 sm:$0xff]  }
  0x9b   :  { %1075 = vmatprep.subr.bf16.mxu0 %v3270_v62  ;;  %2022 = vmatpush1.bf16.msra.mxu1 %v2965_v4  ;;  %v3073_v61 = vld [vmem:[#allocation4 + $0x300] ss:$24 sps:$4 sm:$0xff]  }
  0x9c   :  { %2023 = vmatprep.subr.bf16.mxu1 %v2970_v6 }
  0x9e   :  { %1076 = vmatpush1.bf16.msra.mxu0 %v2952_v63  ;;  %v3081_v63 = vld [vmem:[#allocation4 + $0x45c] ss:$24 sps:$4 sm:$0xff]  }
  0x9f   :  { %1077 = vmatprep.subr.bf16.mxu0 %v3270_v62  ;;  %2024 = vmatpush1.bf16.msra.mxu1 %v2968_v45 }
  0xa0   :  { %2025 = vmatprep.subr.bf16.mxu1 %v2973_v7 }
  0xa2   :  { %1078 = vmatpush1.bf16.msra.mxu0 %v2953_v0 }
  0xa3   :  { %1079 = vmatprep.subr.bf16.mxu0 %v3270_v62  ;;  %2026 = vmatpush1.bf16.msra.mxu1 %v2971_v8  ;;  %v211_v8 = vlaneseq }
  0xa4   :  { %2027 = vmatprep.subr.bf16.mxu1 %v2976_v10 }
  0xa6   :  { %1080 = vmatpush1.bf16.msra.mxu0 %v2954_v2 }
  0xa7   :  { %1081 = vmatprep.subr.bf16.mxu0 %v3270_v62  ;;  %2028 = vmatpush1.bf16.msra.mxu1 %v2974_v11 }
  0xa8   :  { %2029 = vmatprep.subr.bf16.mxu1 %v2979_v14 }
  0xaa   :  { %1082 = vmatpush1.bf16.msra.mxu0 %v2955_v5 }
  0xab   :  { %1083 = vmatprep.subr.bf16.mxu0 %v3270_v62  ;;  %2030 = vmatpush1.bf16.msra.mxu1 %v2977_v15 }
  0xac   :  { %2031 = vmatprep.subr.bf16.mxu1 %v2982_v17 }
  0xae   :  { %1084 = vmatpush1.bf16.msra.mxu0 %v2956_v9  ;;  %v3371_v9 = vshrl.u32 %v211_v8, 7 }
  0xaf   :  { %1085 = vmatprep.subr.bf16.mxu0 %v3270_v62  ;;  %2032 = vmatpush1.bf16.msra.mxu1 %v2980_v18 }
  0xb0   :  { %2033 = vmatprep.subr.bf16.mxu1 %v2985_v20  ;;  %v213_v10 = vsub.s32 0, %v3371_v9  ;;  %v225_v11 = vsub.s32 3, %v3371_v9  ;;  %v217_v13 = vsub.s32 1, %v3371_v9  ;;  %v237_v17 = vsub.s32 6, %v3371_v9 }
  0xb1   :  { %v241_v18 = vsub.s32 7, %v3371_v9 }
  0xb2   :  { %1086 = vmatpush1.bf16.msra.mxu0 %v2957_v12  ;;  %v3378_v12 = vld [vmem:[%s3453_s2] sm:$0xff] }
  0xb3   :  { %1087 = vmatprep.subr.bf16.mxu0 %v3270_v62  ;;  %2034 = vmatpush1.bf16.msra.mxu1 %v2983_v21  ;;  %v214_v14 = vrot.slane %v3378_v12, %v213_v10  ;;  %v226_v15 = vrot.slane %v3378_v12, %v225_v11 }
  0xb4   :  { %2035 = vmatprep.subr.bf16.mxu1 %v2988_v23  ;;  %v238_v23 = vrot.slane %v3378_v12, %v237_v17  ;;  %v2458_v17 = vld [vmem:[%s3453_s2 + $0x8] ss:$0 sm:$0xff] }
  0xb6   :  { %1088 = vmatpush1.bf16.msra.mxu0 %v2958_v16  ;;  %v229_v16 = vsub.s32 4, %v3371_v9 }
  0xb7   :  { %1093 = vmatprep.subr.bf16.mxu0 %v3270_v62  ;;  %2036 = vmatpush1.bf16.msra.mxu1 %v2986_v24  ;;  %v242_v24 = vrot.slane %v3378_v12, %v241_v18  ;;  %v3072_v18 = vld [vmem:[#allocation4 + $0x21c] ss:$24 sps:$4 sm:$0xff]  }
  0xb8   :  { %2037 = vmatprep.subr.bf16.mxu1 %v2991_v26 }
  0xba   :  { %1094 = vmatpush2.bf16.msra.mxu0 %v907_v19  ;;  %v218_v19 = vrot.slane %v3378_v12, %v217_v13 }
  0xbb   :  { %1095 = vmatprep.subr.bf16.mxu0 %v3270_v62  ;;  %2038 = vmatpush2.bf16.msra.mxu1 %v2989_v27 }
  0xbc   :  { %2039 = vmatprep.subr.bf16.mxu1 %v2994_v29 }
  0xbe   :  { %1096 = vmatpush2.bf16.msra.mxu0 %v2960_v22  ;;  %v230_v22 = vrot.slane %v3378_v12, %v229_v16 }
  0xbf   :  { %1097 = vmatprep.subr.bf16.mxu0 %v3270_v62  ;;  %2040 = vmatpush2.bf16.msra.mxu1 %v2992_v30 }
  0xc0   :  { %2041 = vmatprep.subr.bf16.mxu1 %v2997_v32 }
  0xc2   :  { %1098 = vmatpush2.bf16.msra.mxu0 %v2961_v25 }
  0xc3   :  { %1099 = vmatprep.subr.bf16.mxu0 %v3270_v62  ;;  %2042 = vmatpush2.bf16.msra.mxu1 %v2995_v33 }
  0xc4   :  { %2043 = vmatprep.subr.bf16.mxu1 %v3000_v35 }
  0xc6   :  { %1100 = vmatpush2.bf16.msra.mxu0 %v2962_v28 }
  0xc7   :  { %1101 = vmatprep.subr.bf16.mxu0 %v3270_v62  ;;  %2044 = vmatpush2.bf16.msra.mxu1 %v2998_v36 }
  0xc8   :  { %2045 = vmatprep.subr.bf16.mxu1 %v3003_v37 }
  0xca   :  { %1102 = vmatpush2.bf16.msra.mxu0 %v2963_v31 }
  0xcb   :  { %1103 = vmatprep.subr.bf16.mxu0 %v3270_v62  ;;  %2046 = vmatpush2.bf16.msra.mxu1 %v3001_v38 }
  0xcc   :  { %2047 = vmatprep.subr.bf16.mxu1 %v3006_v39 }
  0xce   :  { %1104 = vmatpush2.bf16.msra.mxu0 %v2964_v34 }
  0xcf   :  { %2048 = vmatpush2.bf16.msra.mxu1 %v3004_v40  ;;  %2062 = vmatprep.subr.bf16.mxu0 %v3033_v47  ;;  %v3016_v47 = vld [vmem:[#allocation4 + $0x128] ss:$24 sps:$4 sm:$0xff]  }
  0xd0   :  { %2049 = vmatprep.subr.bf16.mxu1 %v3009_v41 }
  0xd1   :  { %1106 = vmatmul.mubr.bf16.vlgmr.msra.gmra.mxu0 %v3336_v1  ;;  %v3031_v1 = vld [vmem:[#allocation4 + $0x450] ss:$24 sps:$4 sm:$0xff]  }
  0xd2   :  { %2094 = vmatprep.mubr.bf16.mxu0 %v3270_v62  ;;  %2063 = vmatpush1.bf16.msra.mxu0 %v3031_v1  ;;  %v3018_v1 = vld [vmem:[#allocation4 + $0x12c] ss:$24 sps:$4 sm:$0xff]  }
  0xd3   :  { %2050 = vmatpush2.bf16.msra.mxu1 %v3007_v42  ;;  %2064 = vmatprep.subr.bf16.mxu0 %v3039_v49  ;;  %v3019_v49 = vld [vmem:[#allocation4 + $0xf8] ss:$24 sps:$4 sm:$0xff]  }
  0xd4   :  { %2051 = vmatprep.subr.bf16.mxu1 %v3012_v43 }
  0xd6   :  { %2065 = vmatpush1.bf16.msra.mxu0 %v3037_v48  ;;  %v3021_v48 = vld [vmem:[#allocation4 + $0xfc] ss:$24 sps:$4 sm:$0xff]  }
  0xd7   :  { %2052 = vmatpush2.bf16.msra.mxu1 %v3010_v44  ;;  %2066 = vmatprep.subr.bf16.mxu0 %v3045_v51  ;;  %v3013_v44 = vld [vmem:[#allocation4 + $0x158] ss:$24 sps:$4 sm:$0xff]   ;;  %v3022_v51 = vld [vmem:[#allocation4 + $0xc8] ss:$24 sps:$4 sm:$0xff]  }
  0xd8   :  { %2103 = vmatprep.subr.bf16.mxu1 %v3015_v46 }
  0xda   :  { %2067 = vmatpush1.bf16.msra.mxu0 %v3043_v50  ;;  %v3024_v50 = vld [vmem:[#allocation4 + $0xcc] ss:$24 sps:$4 sm:$0xff]  }
  0xdb   :  { %2068 = vmatprep.subr.bf16.mxu0 %v3051_v53  ;;  %v3025_v53 = vld [vmem:[#allocation4 + $0x98] ss:$24 sps:$4 sm:$0xff]  }
  0xde   :  { %2069 = vmatpush1.bf16.msra.mxu0 %v3049_v52  ;;  %v3027_v52 = vld [vmem:[#allocation4 + $0x9c] ss:$24 sps:$4 sm:$0xff]  }
  0xdf   :  { %2070 = vmatprep.subr.bf16.mxu0 %v3057_v55  ;;  %v3028_v55 = vld [vmem:[#allocation4 + $0x68] ss:$24 sps:$4 sm:$0xff]  }
  0xe2   :  { %2071 = vmatpush1.bf16.msra.mxu0 %v3055_v54  ;;  %v3030_v54 = vld [vmem:[#allocation4 + $0x6c] ss:$24 sps:$4 sm:$0xff]  }
  0xe3   :  { %2072 = vmatprep.subr.bf16.mxu0 %v3063_v57  ;;  %v3034_v57 = vld [vmem:[#allocation4 + $0x38] ss:$24 sps:$4 sm:$0xff]  }
  0xe6   :  { %2073 = vmatpush1.bf16.msra.mxu0 %v3061_v56  ;;  %v3036_v56 = vld [vmem:[#allocation4 + $0x3c] ss:$24 sps:$4 sm:$0xff]  }
  0xe7   :  { %2074 = vmatprep.subr.bf16.mxu0 %v3069_v58  ;;  %v3042_v58 = vld [vmem:[#allocation4 + $0xc] ss:$24 sps:$4 sm:$0xff]  }
  0xea   :  { %2075 = vmatpush1.bf16.msra.mxu0 %v3067_v59  ;;  %v3040_v59 = vld [vmem:[#allocation4 + $0x8] ss:$24 sps:$4 sm:$0xff]  }
  0xeb   :  { %2076 = vmatprep.subr.bf16.mxu0 %v3075_v60  ;;  %v3048_v60 = vld [vmem:[#allocation4 + $0x2dc] ss:$24 sps:$4 sm:$0xff]  }
  0xee   :  { %2077 = vmatpush1.bf16.msra.mxu0 %v3073_v61  ;;  %v3046_v61 = vld [vmem:[#allocation4 + $0x2d8] ss:$24 sps:$4 sm:$0xff]  }
  0xef   :  { %2144 = vmatprep.subr.bf16.mxu0 %v3081_v63  ;;  %v3054_v63 = vld [vmem:[#allocation4 + $0x2ac] ss:$24 sps:$4 sm:$0xff]  }
 0x121   :  { %v943_v0 = vpop.f32.mrf.mxu0  ;;  %v3369_v2 = vpop.f32.mrf.mxu1 }
 0x122   :  { %v944_v20 = vadd.f32 %v943_v0, %v214_v14  ;;  %v233_v0 = vsub.s32 5, %v3371_v9 }
 0x123   :  { %v945_v3 = vpop.f32.mrf.mxu0  ;;  %v986_v4 = vpop.f32.mrf.mxu1 }
 0x124   :  { %v987_v21 = vadd.f32 %v986_v4, %v226_v15  ;;  %v946_v27 = vadd.f32 %v945_v3, %v218_v19  ;;  %v3052_v3 = vld [vmem:[#allocation4 + $0x2a8] ss:$24 sps:$4 sm:$0xff]   ;;  %v3060_v4 = vld [vmem:[#allocation4 + $0x27c] ss:$24 sps:$4 sm:$0xff]  }
 0x125   :  { %v947_v5 = vpop.f32.mrf.mxu0  ;;  %v988_v6 = vpop.f32.mrf.mxu1  ;;  %v3064_v15 = vld [vmem:[#allocation4 + $0x248] ss:$24 sps:$4 sm:$0xff]  }
 0x126   :  { %v1113_v28 = vmax.f32 %v944_v20, %v987_v21  ;;  %v221_v5 = vsub.s32 2, %v3371_v9  ;;  %v234_v6 = vrot.slane %v3378_v12, %v233_v0  ;;  %v2738_v9 = vld [vmem:[%s3457_s6] ss:$0 sm:$0xff] }
 0x127   :  { %v948_v45 = vpop.f32.mrf.mxu0  ;;  %v989_v7 = vpop.f32.mrf.mxu1 }
 0x128   :  { %v3058_v45 = vld [vmem:[#allocation4 + $0x278] ss:$24 sps:$4 sm:$0xff]   ;;  %v3066_v7 = vld [vmem:[#allocation4 + $0x24c] ss:$24 sps:$4 sm:$0xff]   ;;  %v222_v8 = vrot.slane %v3378_v12, %v221_v5 }
 0x129   :  { %v3078_v12 = vld [vmem:[#allocation4 + $0x1ec] ss:$24 sps:$4 sm:$0xff]  }
 0x12a   :  { %v985_v19 = vadd.f32 %v3369_v2, %v222_v8  ;;  %v3087_v2 = vld [vmem:[#allocation4 + $0x42c] ss:$24 sps:$4 sm:$0xff]  }
 0x12b   :  { %v3138_v8 = vld [vmem:[#allocation4 + $0x314] ss:$24 sps:$4 sm:$0xff]  }
 0x159   :  { %v1025_v25 = vpop.f32.mrf.mxu0  ;;  %v1066_v26 = vpop.f32.mrf.mxu1 }
 0x15a   :  { %v1026_v29 = vadd.f32 %v1025_v25, %v230_v22  ;;  %v1067_v30 = vadd.f32 %v1066_v26, %v238_v23  ;;  %v3070_v23 = vld [vmem:[#allocation4 + $0x218] ss:$24 sps:$4 sm:$0xff]  }
 0x15b   :  { %v3398_v31 = vpop.f32.mrf.mxu0  ;;  %v1068_v32 = vpop.f32.mrf.mxu1 }
 0x15c   :  { %v1114_v33 = vmax.f32 %v946_v27, %v1026_v29  ;;  %v1116_v34 = vmax.f32 %v1113_v28, %v1067_v30  ;;  %v1069_v35 = vadd.f32 %v1068_v32, %v242_v24  ;;  %v1028_v14 = vadd.f32 %v3398_v31, %v234_v6  ;;  %v3076_v28 = vld [vmem:[#allocation4 + $0x1e8] ss:$24 sps:$4 sm:$0xff]   ;;  %v3079_v30 = vld [vmem:[#allocation4 + $0x458] ss:$24 sps:$4 sm:$0xff]   ;;  %v3084_v31 = vld [vmem:[#allocation4 + $0x1bc] ss:$24 sps:$4 sm:$0xff]  }
 0x15d   :  { %v1029_v36 = vpop.f32.mrf.mxu0  ;;  %v1070_v37 = vpop.f32.mrf.mxu1  ;;  %v3135_v6 = vld [vmem:[#allocation4 + $0x134] ss:$24 sps:$4 sm:$0xff]  }
 0x15e   :  { %v1117_v38 = vmax.f32 %v1114_v33, %v1069_v35  ;;  %v1119_v39 = vmax.f32 %v1116_v34, 0.0  ;;  %v1115_v21 = vmax.f32 %v985_v19, %v1028_v14  ;;  %v3082_v33 = vld [vmem:[#allocation4 + $0x1b8] ss:$24 sps:$4 sm:$0xff]   ;;  %v3085_v34 = vld [vmem:[#allocation4 + $0x428] ss:$24 sps:$4 sm:$0xff]  }
 0x15f   :  { %v1030_v40 = vpop.f32.mrf.mxu0  ;;  %v1071_v41 = vpop.f32.mrf.mxu1  ;;  %v3090_v35 = vld [vmem:[#allocation4 + $0x18c] ss:$24 sps:$4 sm:$0xff]   ;;  %v3093_v36 = vld [vmem:[#allocation4 + $0x3fc] ss:$24 sps:$4 sm:$0xff]   ;;  %v3088_v37 = vld [vmem:[#allocation4 + $0x188] ss:$24 sps:$4 sm:$0xff]  }
 0x160   :  { %v1120_v42 = vmax.f32 %v1117_v38, 0.0  ;;  %v3402_v46 = vpack.c.bf16 %v1119_v39, %v1119_v39  ;;  %v3091_v38 = vld [vmem:[#allocation4 + $0x3f8] ss:$24 sps:$4 sm:$0xff]   ;;  %v3096_v39 = vld [vmem:[#allocation4 + $0x464] ss:$24 sps:$4 sm:$0xff]  }
 0x161   :  { %v3099_v40 = vld [vmem:[#allocation4 + $0x3cc] ss:$24 sps:$4 sm:$0xff]   ;;  %v3094_v41 = vld [vmem:[#allocation4 + $0x460] ss:$24 sps:$4 sm:$0xff]   ;;  %v3142_v19 = vld [vmem:[#allocation4 + $0xd0] ss:$24 sps:$4 sm:$0xff]  }
 0x162   :  { %v3400_v43 = vpack.c.bf16 %v1120_v42, %v1120_v42  ;;  %v3097_v42 = vld [vmem:[#allocation4 + $0x3c8] ss:$24 sps:$4 sm:$0xff]   ;;  %v3141_v14 = vld [vmem:[#allocation4 + $0x104] ss:$24 sps:$4 sm:$0xff]  }
 0x164   :  { %2053 = vmatprep.mubr.bf16.mxu1 %v3400_v43 }
 0x165   :  { %2054 = vmatmul.mubr.bf16.vlgmr.msra.gmra.mxu1 %v3402_v46 }
 0x166   :  { %2104 = vmatpush1.bf16.msra.mxu1 %v3013_v44  ;;  %2135 = vmatprep.mubr.bf16.mxu1 %v3400_v43  ;;  %v3102_v44 = vld [vmem:[#allocation4 + $0x434] ss:$24 sps:$4 sm:$0xff]  }
 0x167   :  { %2105 = vmatprep.subr.bf16.mxu1 %v3018_v1  ;;  %v3105_v1 = vld [vmem:[#allocation4 + $0x39c] ss:$24 sps:$4 sm:$0xff]  }
 0x16a   :  { %2106 = vmatpush1.bf16.msra.mxu1 %v3016_v47  ;;  %v3100_v47 = vld [vmem:[#allocation4 + $0x430] ss:$24 sps:$4 sm:$0xff]  }
 0x16b   :  { %2107 = vmatprep.subr.bf16.mxu1 %v3021_v48  ;;  %v3103_v48 = vld [vmem:[#allocation4 + $0x398] ss:$24 sps:$4 sm:$0xff]  }
 0x16e   :  { %2108 = vmatpush1.bf16.msra.mxu1 %v3019_v49  ;;  %v3108_v49 = vld [vmem:[#allocation4 + $0x404] ss:$24 sps:$4 sm:$0xff]  }
 0x16f   :  { %2109 = vmatprep.subr.bf16.mxu1 %v3024_v50  ;;  %v3111_v50 = vld [vmem:[#allocation4 + $0x36c] ss:$24 sps:$4 sm:$0xff]  }
 0x172   :  { %2110 = vmatpush1.bf16.msra.mxu1 %v3022_v51  ;;  %v3106_v51 = vld [vmem:[#allocation4 + $0x400] ss:$24 sps:$4 sm:$0xff]  }
 0x173   :  { %2111 = vmatprep.subr.bf16.mxu1 %v3027_v52  ;;  %v3109_v52 = vld [vmem:[#allocation4 + $0x368] ss:$24 sps:$4 sm:$0xff]  }
 0x176   :  { %2112 = vmatpush1.bf16.msra.mxu1 %v3025_v53  ;;  %v3114_v53 = vld [vmem:[#allocation4 + $0x3d4] ss:$24 sps:$4 sm:$0xff]  }
 0x177   :  { %2113 = vmatprep.subr.bf16.mxu1 %v3030_v54  ;;  %v3117_v54 = vld [vmem:[#allocation4 + $0x33c] ss:$24 sps:$4 sm:$0xff]  }
 0x17a   :  { %2114 = vmatpush1.bf16.msra.mxu1 %v3028_v55  ;;  %v3112_v55 = vld [vmem:[#allocation4 + $0x3d0] ss:$24 sps:$4 sm:$0xff]  }
 0x17b   :  { %2115 = vmatprep.subr.bf16.mxu1 %v3036_v56  ;;  %v3115_v56 = vld [vmem:[#allocation4 + $0x338] ss:$24 sps:$4 sm:$0xff]  }
 0x17e   :  { %2116 = vmatpush1.bf16.msra.mxu1 %v3034_v57  ;;  %v3123_v57 = vld [vmem:[#allocation4 + $0x30c] ss:$24 sps:$4 sm:$0xff]  }
 0x17f   :  { %2117 = vmatprep.subr.bf16.mxu1 %v3042_v58  ;;  %v3118_v58 = vld [vmem:[#allocation4 + $0x3a0] ss:$24 sps:$4 sm:$0xff]  }
 0x182   :  { %2118 = vmatpush1.bf16.msra.mxu1 %v3040_v59  ;;  %v3121_v59 = vld [vmem:[#allocation4 + $0x308] ss:$24 sps:$4 sm:$0xff]  }
 0x183   :  { %2119 = vmatprep.subr.bf16.mxu1 %v3048_v60  ;;  %v3126_v60 = vld [vmem:[#allocation4 + $0x374] ss:$24 sps:$4 sm:$0xff]  }
 0x186   :  { %2120 = vmatpush2.bf16.msra.mxu1 %v3046_v61  ;;  %v3129_v61 = vld [vmem:[#allocation4 + $0x164] ss:$24 sps:$4 sm:$0xff]  }
 0x187   :  { %2121 = vmatprep.subr.bf16.mxu1 %v3054_v63  ;;  %v3124_v63 = vld [vmem:[#allocation4 + $0x370] ss:$24 sps:$4 sm:$0xff]  }
 0x18a   :  { %2122 = vmatpush2.bf16.msra.mxu1 %v3052_v3  ;;  %v3127_v3 = vld [vmem:[#allocation4 + $0x160] ss:$24 sps:$4 sm:$0xff]  }
 0x18b   :  { %2123 = vmatprep.subr.bf16.mxu1 %v3060_v4  ;;  %v3132_v4 = vld [vmem:[#allocation4 + $0x344] ss:$24 sps:$4 sm:$0xff]  }
 0x18e   :  { %2124 = vmatpush2.bf16.msra.mxu1 %v3058_v45  ;;  %v3130_v45 = vld [vmem:[#allocation4 + $0x340] ss:$24 sps:$4 sm:$0xff]  }
 0x18f   :  { %2125 = vmatprep.subr.bf16.mxu1 %v3066_v7  ;;  %v3133_v7 = vld [vmem:[#allocation4 + $0x130] ss:$24 sps:$4 sm:$0xff]  }
 0x191   :  { %v1107_v20 = vpop.f32.mrf.mxu0 }
 0x192   :  { %v1108_v22 = vadd.f32 %v2458_v17, %v1107_v20  ;;  %2126 = vmatpush2.bf16.msra.mxu1 %v3064_v15  ;;  %v3136_v15 = vld [vmem:[#allocation4 + $0x310] ss:$24 sps:$4 sm:$0xff]   ;;  %v3139_v17 = vld [vmem:[#allocation4 + $0x100] ss:$24 sps:$4 sm:$0xff]   ;;  %v3147_v20 = vld [vmem:[#allocation4 + $0xa4] ss:$24 sps:$4 sm:$0xff]  }
 0x193   :  { %v1109_v24 = vpop.f32.mrf.mxu0  ;;  %2127 = vmatprep.subr.bf16.mxu1 %v3072_v18  ;;  %v3144_v18 = vld [vmem:[#allocation4 + $0xd4] ss:$24 sps:$4 sm:$0xff]  }
 0x194   :  { %v1118_v25 = vmax.f32 %v1115_v21, %v1108_v22  ;;  %v3150_v21 = vld [vmem:[#allocation4 + $0x74] ss:$24 sps:$4 sm:$0xff]   ;;  %v3148_v22 = vld [vmem:[#allocation4 + $0x70] ss:$24 sps:$4 sm:$0xff]   ;;  %v3151_v24 = vld [vmem:[#allocation4 + $0x40] ss:$24 sps:$4 sm:$0xff]  }
 0x195   :  { %v1110_v26 = vpop.f32.mrf.mxu0 }
 0x196   :  { %v1121_v27 = vmax.f32 %v1118_v25, 0.0  ;;  %2128 = vmatpush2.bf16.msra.mxu1 %v3070_v23  ;;  %v3153_v23 = vld [vmem:[#allocation4 + $0x44] ss:$24 sps:$4 sm:$0xff]   ;;  %v3154_v25 = vld [vmem:[#allocation4 + $0x10] ss:$24 sps:$4 sm:$0xff]  }
 0x197   :  { %v1111_v29 = vpop.f32.mrf.mxu0  ;;  %2129 = vmatprep.subr.bf16.mxu1 %v3078_v12  ;;  %v3156_v12 = vld [vmem:[#allocation4 + $0x14] ss:$24 sps:$4 sm:$0xff]   ;;  %v3159_v26 = vld [vmem:[#allocation4 + $0x2e4] ss:$24 sps:$4 sm:$0xff]  }
 0x198   :  { %v3420_v32 = vpack.c.bf16 %v1121_v27, %v1121_v27  ;;  %v3157_v27 = vld [vmem:[#allocation4 + $0x2e0] ss:$24 sps:$4 sm:$0xff]   ;;  %v3160_v29 = vld [vmem:[#allocation4 + $0x2b0] ss:$24 sps:$4 sm:$0xff]  }
 0x19a   :  { %2130 = vmatpush2.bf16.msra.mxu1 %v3076_v28  ;;  %2095 = vmatmul.mubr.bf16.vlgmr.msra.gmra.mxu0 %v3420_v32  ;;  %v3162_v28 = vld [vmem:[#allocation4 + $0x2b4] ss:$24 sps:$4 sm:$0xff]  }
 0x19b   :  { %2145 = vmatpush1.bf16.msra.mxu0 %v3079_v30  ;;  %2131 = vmatprep.subr.bf16.mxu1 %v3084_v31  ;;  %v3165_v30 = vld [vmem:[#allocation4 + $0x284] ss:$24 sps:$4 sm:$0xff]   ;;  %v3163_v31 = vld [vmem:[#allocation4 + $0x280] ss:$24 sps:$4 sm:$0xff]  }
 0x19c   :  { %2146 = vmatprep.subr.bf16.mxu0 %v3087_v2  ;;  %2176 = vmatprep.mubr.bf16.mxu0 %v3270_v62  ;;  %v3166_v2 = vld [vmem:[#allocation4 + $0x250] ss:$24 sps:$4 sm:$0xff]  }
 0x19e   :  { %2132 = vmatpush2.bf16.msra.mxu1 %v3082_v33  ;;  %v3171_v33 = vld [vmem:[#allocation4 + $0x224] ss:$24 sps:$4 sm:$0xff]  }
 0x19f   :  { %2147 = vmatpush1.bf16.msra.mxu0 %v3085_v34  ;;  %2133 = vmatprep.subr.bf16.mxu1 %v3090_v35  ;;  %v3169_v34 = vld [vmem:[#allocation4 + $0x220] ss:$24 sps:$4 sm:$0xff]   ;;  %v3174_v35 = vld [vmem:[#allocation4 + $0x1f4] ss:$24 sps:$4 sm:$0xff]  }
 0x1a0   :  { %2148 = vmatprep.subr.bf16.mxu0 %v3093_v36  ;;  %v3172_v36 = vld [vmem:[#allocation4 + $0x1f0] ss:$24 sps:$4 sm:$0xff]  }
 0x1a2   :  { %2134 = vmatpush2.bf16.msra.mxu1 %v3088_v37  ;;  %v3177_v37 = vld [vmem:[#allocation4 + $0x1c4] ss:$24 sps:$4 sm:$0xff]  }
 0x1a3   :  { %2149 = vmatpush1.bf16.msra.mxu0 %v3091_v38  ;;  %2226 = vmatprep.subr.bf16.mxu1 %v3096_v39  ;;  %v3175_v38 = vld [vmem:[#allocation4 + $0x1c0] ss:$24 sps:$4 sm:$0xff]   ;;  %v3180_v39 = vld [vmem:[#allocation4 + $0x194] ss:$24 sps:$4 sm:$0xff]  }
 0x1a4   :  { %2150 = vmatprep.subr.bf16.mxu0 %v3099_v40  ;;  %v3178_v40 = vld [vmem:[#allocation4 + $0x190] ss:$24 sps:$4 sm:$0xff]  }
 0x1a5   :  { %2136 = vmatmul.mubr.bf16.vlgmr.msra.gmra.mxu1 %v3402_v46 }
 0x1a6   :  { %2227 = vmatpush1.bf16.msra.mxu1 %v3094_v41  ;;  %2258 = vmatprep.mubr.bf16.mxu1 %v3270_v62  ;;  %v3120_v62 = vld [vmem:[#allocation4 + $0x3a4] ss:$24 sps:$4 sm:$0xff]  }
 0x1a7   :  { %2151 = vmatpush1.bf16.msra.mxu0 %v3097_v42  ;;  %2228 = vmatprep.subr.bf16.mxu1 %v3102_v44  ;;  %v3181_v41 = vld [vmem:[#allocation6 + $0x78] sm:$0xff]   ;;  %v3183_v44 = vld [vmem:[#allocation6 + $0x70] sm:$0xff]  }
 0x1a8   :  { %2152 = vmatprep.subr.bf16.mxu0 %v3105_v1  ;;  %v3182_v42 = vld [vmem:[#allocation6 + $0x38] sm:$0xff]   ;;  %v3184_v1 = vld [vmem:[#allocation6 + $0x30] sm:$0xff]  }
 0x1aa   :  { %2229 = vmatpush1.bf16.msra.mxu1 %v3100_v47  ;;  %v3185_v47 = vld [vmem:[#allocation6 + $0x68] sm:$0xff]  }
 0x1ab   :  { %2153 = vmatpush1.bf16.msra.mxu0 %v3103_v48  ;;  %2230 = vmatprep.subr.bf16.mxu1 %v3108_v49  ;;  %v3186_v48 = vld [vmem:[#allocation6 + $0x28] sm:$0xff]   ;;  %v3187_v49 = vld [vmem:[#allocation6 + $0x60] sm:$0xff]  }
 0x1ac   :  { %2154 = vmatprep.subr.bf16.mxu0 %v3111_v50  ;;  %v3188_v50 = vld [vmem:[#allocation6 + $0x20] sm:$0xff]  }
 0x1ae   :  { %2231 = vmatpush1.bf16.msra.mxu1 %v3106_v51  ;;  %v3189_v51 = vld [vmem:[#allocation6 + $0x58] sm:$0xff]  }
 0x1af   :  { %2155 = vmatpush1.bf16.msra.mxu0 %v3109_v52  ;;  %2232 = vmatprep.subr.bf16.mxu1 %v3114_v53  ;;  %v3190_v52 = vld [vmem:[#allocation6 + $0x18] sm:$0xff]  }
 0x1b0   :  { %2156 = vmatprep.subr.bf16.mxu0 %v3117_v54 }
 0x1b2   :  { %2233 = vmatpush1.bf16.msra.mxu1 %v3112_v55 }
 0x1b3   :  { %2157 = vmatpush1.bf16.msra.mxu0 %v3115_v56  ;;  %2234 = vmatprep.subr.bf16.mxu1 %v3120_v62  ;;  %v3191_v56 = vld [vmem:[#allocation6 + $0x50] sm:$0xff]  }
 0x1b4   :  { %2158 = vmatprep.subr.bf16.mxu0 %v3123_v57  ;;  %v3192_v62 = vld [vmem:[#allocation6 + $0x10] sm:$0xff]   ;;  %v3193_v57 = vld [vmem:[#allocation6 + $0x48] sm:$0xff]  }
 0x1b6   :  { %2235 = vmatpush1.bf16.msra.mxu1 %v3118_v58  ;;  %v3194_v58 = vld [vmem:[#allocation6 + $0x8] sm:$0xff]  }
 0x1b7   :  { %2159 = vmatpush1.bf16.msra.mxu0 %v3121_v59  ;;  %2236 = vmatprep.subr.bf16.mxu1 %v3126_v60  ;;  %v3195_v59 = vld [vmem:[#allocation6 + $0x40] sm:$0xff]  }
 0x1b8   :  { %2185 = vmatprep.subr.bf16.mxu0 %v3129_v61  ;;  %v3196_v60 = vld [vmem:[#allocation6] sm:$0xff]   ;;  %v1269_v61 = vld [vmem:[%s3455_s4] sm:$0x3f] }
 0x1ba   :  { %2177 = vmatmul.mubr.bf16.vlgmr.msra.gmra.mxu0 %v3420_v32  ;;  %2237 = vmatpush1.bf16.msra.mxu1 %v3124_v63  ;;  %v1274_v63 = vrot.slane %v1269_v61, %v213_v10  ;;  %v1286_v10 = vrot.slane %v1269_v61, %v225_v11  ;;  %v1294_v11 = vrot.slane %v1269_v61, %v233_v0 }
 0x1bb   :  { %2186 = vmatpush1.bf16.msra.mxu0 %v3127_v3  ;;  %2217 = vmatprep.mubr.bf16.mxu0 %v3400_v43  ;;  %v3145_v43 = vld [vmem:[#allocation4 + $0xa0] ss:$24 sps:$4 sm:$0xff]   ;;  %v1278_v3 = vrot.slane %v1269_v61, %v217_v13 }
 0x1bc   :  { %2238 = vmatprep.subr.bf16.mxu1 %v3132_v4  ;;  %2187 = vmatprep.subr.bf16.mxu0 %v3135_v6 }
 0x1be   :  { %2239 = vmatpush1.bf16.msra.mxu1 %v3130_v45 }
 0x1bf   :  { %2188 = vmatpush1.bf16.msra.mxu0 %v3133_v7  ;;  %2240 = vmatprep.subr.bf16.mxu1 %v3138_v8 }
 0x1c0   :  { %2189 = vmatprep.subr.bf16.mxu0 %v3141_v14 }
 0x1c2   :  { %2241 = vmatpush1.bf16.msra.mxu1 %v3136_v15 }
 0x1c3   :  { %2190 = vmatpush1.bf16.msra.mxu0 %v3139_v17  ;;  %2755 = vmatprep.subr.bf16.mxu1 %v3181_v41 }
 0x1c4   :  { %2191 = vmatprep.subr.bf16.mxu0 %v3144_v18 }
 0x1c5   :  { %2259 = vmatmul.mubr.bf16.vlgmr.msra.gmra.mxu1 %v3420_v32  ;;  %v3168_v32 = vld [vmem:[#allocation4 + $0x254] ss:$24 sps:$4 sm:$0xff]  }
 0x1c6   :  { %2756 = vmatpush3.bf16.msra.mxu1 %v3182_v42 }
 0x1c7   :  { %2192 = vmatpush1.bf16.msra.mxu0 %v3142_v19  ;;  %2757 = vmatprep.subr.bf16.mxu1 %v3183_v44 }
 0x1c8   :  { %2193 = vmatprep.subr.bf16.mxu0 %v3147_v20 }
 0x1ca   :  { %2758 = vmatpush3.bf16.msra.mxu1 %v3184_v1 }
 0x1cb   :  { %2194 = vmatpush1.bf16.msra.mxu0 %v3145_v43  ;;  %2759 = vmatprep.subr.bf16.mxu1 %v3185_v47 }
 0x1cc   :  { %2195 = vmatprep.subr.bf16.mxu0 %v3150_v21  ;;  %v1282_v21 = vrot.slane %v1269_v61, %v221_v5  ;;  %v1290_v5 = vrot.slane %v1269_v61, %v229_v16 }
 0x1ce   :  { %2760 = vmatpush3.bf16.msra.mxu1 %v3186_v48 }
 0x1cf   :  { %2196 = vmatpush1.bf16.msra.mxu0 %v3148_v22  ;;  %2761 = vmatprep.subr.bf16.mxu1 %v3187_v49 }
 0x1d0   :  { %2197 = vmatprep.subr.bf16.mxu0 %v3153_v23 }
 0x1d2   :  { %2762 = vmatpush3.bf16.msra.mxu1 %v3188_v50 }
 0x1d3   :  { %2198 = vmatpush1.bf16.msra.mxu0 %v3151_v24  ;;  %2763 = vmatprep.subr.bf16.mxu1 %v3189_v51 }
 0x1d4   :  { %2199 = vmatprep.subr.bf16.mxu0 %v3156_v12 }
 0x1d6   :  { %2764 = vmatpush3.bf16.msra.mxu1 %v3190_v52 }
 0x1d7   :  { %2200 = vmatpush1.bf16.msra.mxu0 %v3154_v25  ;;  %2765 = vmatprep.subr.bf16.mxu1 %v3191_v56 }
 0x1d8   :  { %2201 = vmatprep.subr.bf16.mxu0 %v3159_v26 }
 0x1da   :  { %2766 = vmatpush3.bf16.msra.mxu1 %v3192_v62 }
 0x1db   :  { %2202 = vmatpush2.bf16.msra.mxu0 %v3157_v27  ;;  %2767 = vmatprep.subr.bf16.mxu1 %v3193_v57 }
 0x1dc   :  { %2203 = vmatprep.subr.bf16.mxu0 %v3162_v28 }
 0x1de   :  { %2768 = vmatpush3.bf16.msra.mxu1 %v3194_v58 }
 0x1df   :  { %2204 = vmatpush2.bf16.msra.mxu0 %v3160_v29  ;;  %2769 = vmatprep.subr.bf16.mxu1 %v3195_v59 }
 0x1e0   :  { %2205 = vmatprep.subr.bf16.mxu0 %v3165_v30 }
 0x1e2   :  { %2770 = vmatpush3.bf16.msra.mxu1 %v3196_v60 }
 0x1e3   :  { %2206 = vmatpush2.bf16.msra.mxu0 %v3163_v31 }
 0x1e4   :  { %2207 = vmatprep.subr.bf16.mxu0 %v3168_v32 }
 0x1e7   :  { %2208 = vmatpush2.bf16.msra.mxu0 %v3166_v2 }
 0x1e8   :  { %2209 = vmatprep.subr.bf16.mxu0 %v3171_v33 }
 0x1eb   :  { %2210 = vmatpush2.bf16.msra.mxu0 %v3169_v34 }
 0x1ec   :  { %2211 = vmatprep.subr.bf16.mxu0 %v3174_v35 }
 0x1ef   :  { %2212 = vmatpush2.bf16.msra.mxu0 %v3172_v36 }
 0x1f0   :  { %2213 = vmatprep.subr.bf16.mxu0 %v3177_v37 }
 0x1f3   :  { %2214 = vmatpush2.bf16.msra.mxu0 %v3175_v38 }
 0x1f4   :  { %2215 = vmatprep.subr.bf16.mxu0 %v3180_v39 }
 0x1f7   :  { %2216 = vmatpush2.bf16.msra.mxu0 %v3178_v40 }
 0x1fa   :  { %2218 = vmatmul.mubr.bf16.vlgmr.msra.gmra.mxu0 %v3402_v46 }
 0x225   :  { %v2055_v46 = vpop.f32.mrf.mxu1 }
 0x226   :  { %v2056_v4 = vadd.f32 %v2055_v46, %v1274_v63 }
 0x227   :  { %v2057_v53 = vpop.f32.mrf.mxu1 }
 0x228   :  { %v2058_v45 = vadd.f32 %v2057_v53, %v1278_v3 }
 0x229   :  { %v2059_v54 = vpop.f32.mrf.mxu1 }
 0x22b   :  { %v2060_v55 = vpop.f32.mrf.mxu1 }
 0x25a   :  { %v2096_v6 = vpop.f32.mrf.mxu0 }
 0x25b   :  { %v2097_v7 = vadd.f32 %v2096_v6, %v2056_v4 }
 0x25c   :  { %v2098_v8 = vpop.f32.mrf.mxu0 }
 0x25d   :  { %v2099_v14 = vadd.f32 %v2098_v8, %v2058_v45 }
 0x25e   :  { %v2100_v15 = vpop.f32.mrf.mxu0 }
 0x260   :  { %v2101_v17 = vpop.f32.mrf.mxu0 }
 0x265   :  { %v2137_v18 = vpop.f32.mrf.mxu1 }
 0x266   :  { %v2138_v22 = vadd.f32 %v2137_v18, %v1282_v21 }
 0x267   :  { %v2139_v19 = vpop.f32.mrf.mxu1 }
 0x268   :  { %v2140_v23 = vadd.f32 %v2139_v19, %v1286_v10 }
 0x269   :  { %v2141_v20 = vpop.f32.mrf.mxu1 }
 0x26b   :  { %v2142_v43 = vpop.f32.mrf.mxu1 }
 0x27a   :  { %v2178_v13 = vpop.f32.mrf.mxu0 }
 0x27b   :  { %v2179_v24 = vadd.f32 %v2178_v13, %v2138_v22 }
 0x27c   :  { %v2180_v12 = vpop.f32.mrf.mxu0 }
 0x27d   :  { %v2267_v25 = vmax.f32 %v2097_v7, %v2179_v24  ;;  %v2181_v26 = vadd.f32 %v2180_v12, %v2140_v23 }
 0x27e   :  { %v2182_v27 = vpop.f32.mrf.mxu0 }
 0x27f   :  { %v2268_v28 = vmax.f32 %v2099_v14, %v2181_v26 }
 0x280   :  { %v2183_v29 = vpop.f32.mrf.mxu0 }
 0x285   :  { %v2260_v30 = vpop.f32.mrf.mxu1 }
 0x287   :  { %v2262_v31 = vpop.f32.mrf.mxu1 }
 0x289   :  { %v2264_v32 = vpop.f32.mrf.mxu1 }
 0x28b   :  { %v2265_v2 = vpop.f32.mrf.mxu1 }
 0x2ba   :  { %v2219_v33 = vpop.f32.mrf.mxu0 }
 0x2bb   :  { %v2220_v34 = vadd.f32 %v2219_v33, %v1290_v5 }
 0x2bc   :  { %v2221_v35 = vpop.f32.mrf.mxu0 }
 0x2bd   :  { %v2261_v36 = vadd.f32 %v2260_v30, %v2220_v34  ;;  %v2222_v37 = vadd.f32 %v2221_v35, %v1294_v11 }
 0x2be   :  { %v2223_v38 = vpop.f32.mrf.mxu0 }
 0x2bf   :  { %v2269_v39 = vmax.f32 %v2267_v25, %v2261_v36  ;;  %v2263_v40 = vadd.f32 %v2262_v31, %v2222_v37 }
 0x2c0   :  { %v2224_v41 = vpop.f32.mrf.mxu0 }
 0x2c1   :  { %v2270_v42 = vmax.f32 %v2268_v28, %v2263_v40  ;;  %v2271_v44 = vmax.f32 %v2269_v39, 0.0 }
 0x2c3   :  { %v2272_v1 = vmax.f32 %v2270_v42, 0.0  ;;  %v2273_v48 = vpack.c.bf16 %v2271_v44, %v2271_v44 }
 0x2c5   :  { %v2274_v47 = vpack.c.bf16 %v2272_v1, %v2272_v1 }
 0x2c7   :  { %2442 = vmatprep.mubr.bf16.mxu1 %v2274_v47 }
 0x2c8   :  { %2443 = vmatmul.mubr.bf16.vlgmr.msra.gmra.mxu1 %v2273_v48 }
 0x388   :  { %v2771_v16 = vpop.f32.mrf.mxu1 }
 0x38a   :  { %v2772_v0 = vpop.f32.mrf.mxu1 }
 0x38b   :  { %v2773_v49 = vadd.f32 %v2772_v0, %v2771_v16 }
 0x38c   :  { %v2774_v50 = vpop.f32.mrf.mxu1 }
 0x38d   :  { %v2445_v51 = vadd.f32 %v2773_v49, %v2738_v9 }
 0x38e   :  { %v2775_v52 = vpop.f32.mrf.mxu1 }
 0x38f   :  { %v2450_v46 = vmax.f32 %v2445_v51, 0.0 }
 0x391   :  { %2451 = vst [vmem:[%s3458_s7] sm:$0xff] %v2450_v46 }
 0x392   :  { %2456 = vsyncpa [#allocation3], 1 }
 0x393   :  { %2457 = vsyncpa [#allocation5], 1 }

</bundles_post_ra>
